<compile_context>
chip_gen: v7x
topology: tpu7x:2x2x1
jax: 0.10.0
libtpu: 0.0.40
codegen_flags: <defaults>
</compile_context>

<pallas_src>
import functools

import jax
import jax.numpy as jnp
import numpy as np
from jax.experimental import pallas as pl
from jax.experimental.pallas import tpu as pltpu


# ---------------------------------------------------------------------------
# in-kernel helpers
# ---------------------------------------------------------------------------
def _layernorm(x, gamma, beta, eps=1e-5):
    """LayerNorm over the last dim (PyTorch default eps=1e-5), f32 math."""
    mu = jnp.mean(x, axis=-1, keepdims=True)
    var = jnp.mean((x - mu) ** 2, axis=-1, keepdims=True)
    return (x - mu) * jax.lax.rsqrt(var + eps) * gamma + beta


# ---------------------------------------------------------------------------
# single fused kernel: all transformer blocks + ln_f + lm_head
# ---------------------------------------------------------------------------
def fused_forward_kernel(b_local, seq_len, n_head, n_layers,
                         x_ref,
                         g1_ref, b1_ref,
                         wq_ref, wk_ref, wv_ref,
                         wo_ref, bo_ref,
                         g2_ref, b2_ref,
                         w_ff1_ref, b_ff1_ref,
                         g_ffln_ref, b_ffln_ref,
                         w_ff2_ref, b_ff2_ref,
                         lnf_g_ref, lnf_b_ref,
                         w_head_ref, b_head_ref,
                         o_ref):
    f32, bf16 = jnp.float32, jnp.bfloat16
    T = seq_len
    H = n_head
    x = x_ref[...].astype(f32)                     # (b_local*T, C), f32 residual stream
    C = x.shape[-1]
    # NOTE: reference scales scores by C**-0.5 with C = n_embd (not head_size).
    scale = 1.0 / (C ** 0.5)

    # causal mask, hoisted out of the layer/batch loops (broadcast over heads).
    row = jax.lax.broadcasted_iota(jnp.int32, (T, T), 0)
    col = jax.lax.broadcasted_iota(jnp.int32, (T, T), 1)
    causal = jnp.broadcast_to(col <= row, (H, T, T))

    for l in range(n_layers):                      # static unroll (small n_layers)
        # ---- self-attention sublayer: x = x + proj(multi_head(ln1(x))) ----
        xn = _layernorm(x, g1_ref[l], b1_ref[l])   # (rows, C) f32
        wq = wq_ref[l]                             # (H, C, hs)  bf16
        wk = wk_ref[l]
        wv = wv_ref[l]
        wo = wo_ref[l]                             # (H, hs, C)  bf16

        sa_chunks = []
        for b in range(b_local):                   # static, tiny loop (sequences)
            xb = xn[b * T:(b + 1) * T].astype(bf16)        # (T, C), 8-row aligned slice
            xh = jnp.broadcast_to(xb[None], (H, T, C))     # (H, T, C)
            q = jnp.einsum('htc,hcd->htd', xh, wq, preferred_element_type=f32)
            k = jnp.einsum('htc,hcd->htd', xh, wk, preferred_element_type=f32)
            v = jnp.einsum('htc,hcd->htd', xh, wv, preferred_element_type=f32)
            wei = jnp.einsum('htd,hsd->hts', q.astype(bf16), k.astype(bf16),
                             preferred_element_type=f32) * scale     # (H, T, T)
            wei = jnp.where(causal, wei, -jnp.inf)
            wei = wei - jnp.max(wei, axis=-1, keepdims=True)
            p = jnp.exp(wei)                                          # f32, EUP
            p = p * pl.reciprocal(jnp.sum(p, axis=-1, keepdims=True), approx=True)
            att = jnp.einsum('hts,hsd->htd', p.astype(bf16), v.astype(bf16),
                             preferred_element_type=f32)              # (H, T, hs)
            # head recombination + output projection in one head-batched matmul
            proj = jnp.einsum('htd,hdc->htc', att.astype(bf16), wo,
                              preferred_element_type=f32)             # (H, T, C)
            sa_chunks.append(jnp.sum(proj, axis=0) + bo_ref[l])       # (T, C)
        sa = sa_chunks[0] if b_local == 1 else jnp.concatenate(sa_chunks, axis=0)
        x = x + sa

        # ---- feed-forward sublayer: Linear -> LayerNorm -> ReLU -> Linear ----
        xn2 = _layernorm(x, g2_ref[l], b2_ref[l])
        h1 = jnp.dot(xn2.astype(bf16), w_ff1_ref[l],
                     preferred_element_type=f32) + b_ff1_ref[l]
        h1 = _layernorm(h1, g_ffln_ref[l], b_ffln_ref[l])
        h1 = jnp.maximum(h1, 0.0)
        h2 = jnp.dot(h1.astype(bf16), w_ff2_ref[l],
                     preferred_element_type=f32) + b_ff2_ref[l]
        x = x + h2

    # ---- final LayerNorm + lm_head (lane-dense, vocab padded to 128) ----
    xf = _layernorm(x, lnf_g_ref[...], lnf_b_ref[...])
    o_ref[...] = jnp.dot(xf.astype(bf16), w_head_ref[...],
                         preferred_element_type=f32) + b_head_ref[...]


# ---------------------------------------------------------------------------
# parameter preparation (plain-JAX glue, done once per call outside the kernel)
# ---------------------------------------------------------------------------
_KERNEL_PARAM_ORDER = ["g1", "b1", "wq", "wk", "wv", "wo", "bo", "g2", "b2",
                       "w_ff1", "b_ff1", "g_ffln", "b_ffln", "w_ff2", "b_ff2",
                       "lnf_g", "lnf_b", "w_head", "b_head"]


def _prepare_params(params, n_head):
    """Stack per-layer params on a leading axis, pre-split attention weights per
    head, cast matmul weights to bf16 (halves DMA/VMEM bytes), pad lm_head to a
    lane-dense vocab multiple of 128. LayerNorm params and biases stay f32."""
    layers = params["layers"]
    C = params["tok_emb"].shape[1]
    hs = C // n_head
    bf16, f32 = jnp.bfloat16, jnp.float32

    def stack(name):
        return jnp.stack([p[name] for p in layers], axis=0)

    prepped = {
        "g1": stack("g1").astype(f32),
        "b1": stack("b1").astype(f32),
        # (L, C, C) -> (L, H, C, hs): columns h*hs:(h+1)*hs belong to head h
        "wq": stack("wq").reshape(-1, C, n_head, hs).transpose(0, 2, 1, 3).astype(bf16),
        "wk": stack("wk").reshape(-1, C, n_head, hs).transpose(0, 2, 1, 3).astype(bf16),
        "wv": stack("wv").reshape(-1, C, n_head, hs).transpose(0, 2, 1, 3).astype(bf16),
        # (L, C, C) -> (L, H, hs, C): rows h*hs:(h+1)*hs of the proj belong to head h
        "wo": stack("wo").reshape(-1, n_head, hs, C).astype(bf16),
        "bo": stack("bo").astype(f32),
        "g2": stack("g2").astype(f32),
        "b2": stack("b2").astype(f32),
        "w_ff1": stack("w_ff1").astype(bf16),
        "b_ff1": stack("b_ff1").astype(f32),
        "g_ffln": stack("g_ffln").astype(f32),
        "b_ffln": stack("b_ffln").astype(f32),
        "w_ff2": stack("w_ff2").astype(bf16),
        "b_ff2": stack("b_ff2").astype(f32),
        "lnf_g": params["ln_f_g"].astype(f32),
        "lnf_b": params["ln_f_b"].astype(f32),
    }
    V = params["w_head"].shape[1]
    Vp = ((V + 127) // 128) * 128                      # lane-dense padded vocab
    w_head = jnp.zeros((C, Vp), f32).at[:, :V].set(params["w_head"])
    b_head = jnp.zeros((1, Vp), f32).at[:, :V].set(params["b_head"])
    prepped["w_head"] = w_head.astype(bf16)
    prepped["b_head"] = b_head
    return prepped, V, Vp


# ---------------------------------------------------------------------------
# wrapper: BigramLanguageModel.forward with targets=None (loss is None)
# ---------------------------------------------------------------------------
def forward(idx, params, n_head):
    B, T = idx.shape
    C = params["tok_emb"].shape[1]
    n_layers = len(params["layers"])

    tok = jnp.take(params["tok_emb"], idx, axis=0)     # (B, T, C)  glue gather
    pos = params["pos_emb"][:T]
    x = (tok + pos[None]).reshape(B * T, C).astype(jnp.float32)

    prepped, V, Vp = _prepare_params(params, n_head)
    weights = [prepped[k] for k in _KERNEL_PARAM_ORDER]

    # Split the flattened batch over a small "parallel" grid axis so both of
    # v7x's TensorCores get work; on v5e/v6e this is a cheap 2-iteration loop.
    n_splits = 2 if B % 2 == 0 else 1
    b_local = B // n_splits
    rows = b_local * T

    def full_spec(arr):
        nd = arr.ndim
        return pl.BlockSpec(arr.shape, lambda i, nd=nd: (0,) * nd)

    kernel = functools.partial(fused_forward_kernel, b_local, T, n_head, n_layers)
    logits_padded = pl.pallas_call(
        kernel,
        out_shape=jax.ShapeDtypeStruct((B * T, Vp), jnp.float32),
        grid=(n_splits,),
        in_specs=[pl.BlockSpec((rows, C), lambda i: (i, 0))]
                 + [full_spec(w) for w in weights],
        out_specs=pl.BlockSpec((rows, Vp), lambda i: (i, 0)),
        compiler_params=pltpu.CompilerParams(dimension_semantics=("parallel",)),
    )(x, *weights)

    return logits_padded.reshape(B, T, Vp)[:, :, :V]


# ---------------------------------------------------------------------------
# deterministic synthetic parameter init
# ---------------------------------------------------------------------------
def init_layer(key, C):
    ks = jax.random.split(key, 9)
    s = 0.02
    f32 = jnp.float32
    return {
        "g1": jnp.ones((1, C), f32),
        "b1": jnp.zeros((1, C), f32),
        "wq": s * jax.random.normal(ks[0], (C, C), f32),
        "wk": s * jax.random.normal(ks[1], (C, C), f32),
        "wv": s * jax.random.normal(ks[2], (C, C), f32),
        "wo": s * jax.random.normal(ks[3], (C, C), f32),
        "bo": s * jax.random.normal(ks[4], (1, C), f32),
        "g2": jnp.ones((1, C), f32),
        "b2": jnp.zeros((1, C), f32),
        "w_ff1": s * jax.random.normal(ks[5], (C, 4 * C), f32),
        "b_ff1": s * jax.random.normal(ks[6], (1, 4 * C), f32),
        "g_ffln": jnp.ones((1, 4 * C), f32),
        "b_ffln": jnp.zeros((1, 4 * C), f32),
        "w_ff2": s * jax.random.normal(ks[7], (4 * C, C), f32),
        "b_ff2": s * jax.random.normal(ks[8], (1, C), f32),
    }


def init_params(key, vocab_size, block_size, n_embd, n_layers):
    keys = jax.random.split(key, 4 + n_layers)
    s = 0.02
    f32 = jnp.float32
    return {
        "tok_emb": s * jax.random.normal(keys[0], (vocab_size, n_embd), f32),
        "pos_emb": s * jax.random.normal(keys[1], (block_size, n_embd), f32),
        "ln_f_g": jnp.ones((1, n_embd), f32),
        "ln_f_b": jnp.zeros((1, n_embd), f32),
        "w_head": s * jax.random.normal(keys[2], (n_embd, vocab_size), f32),
        "b_head": s * jax.random.normal(keys[3], (1, vocab_size), f32),
        "layers": [init_layer(keys[4 + i], n_embd) for i in range(n_layers)],
    }


# ---------------------------------------------------------------------------
# pure-JAX f32 reference (mirrors the PyTorch forward)
# ---------------------------------------------------------------------------
def _ln_ref(x, g, b, eps=1e-5):
    mu = x.mean(-1, keepdims=True)
    var = ((x - mu) ** 2).mean(-1, keepdims=True)
    return (x - mu) / jnp.sqrt(var + eps) * g + b


def ref_forward(idx, params, n_head):
    B, T = idx.shape
    x = params["tok_emb"][idx] + params["pos_emb"][:T][None]
    C = x.shape[-1]
    hs = C // n_head
    mask = jnp.tril(jnp.ones((T, T), bool))
    for p in params["layers"]:
        xn = _ln_ref(x, p["g1"], p["b1"])
        q = xn @ p["wq"]
        k = xn @ p["wk"]
        v = xn @ p["wv"]
        outs = []
        for h in range(n_head):
            qh = q[..., h * hs:(h + 1) * hs]
            kh = k[..., h * hs:(h + 1) * hs]
            vh = v[..., h * hs:(h + 1) * hs]
            wei = qh @ jnp.swapaxes(kh, -1, -2) * (C ** -0.5)
            wei = jnp.where(mask, wei, -jnp.inf)
            wei = jax.nn.softmax(wei, axis=-1)
            outs.append(wei @ vh)
        x = x + (jnp.concatenate(outs, -1) @ p["wo"] + p["bo"])
        xn2 = _ln_ref(x, p["g2"], p["b2"])
        h1 = jax.nn.relu(_ln_ref(xn2 @ p["w_ff1"] + p["b_ff1"],
                                 p["g_ffln"], p["b_ffln"]))
        x = x + (h1 @ p["w_ff2"] + p["b_ff2"])
    xf = _ln_ref(x, params["ln_f_g"], params["ln_f_b"])
    return xf @ params["w_head"] + params["b_head"]


# ---------------------------------------------------------------------------
if __name__ == "__main__":
    # small config consistent with the module (scaled down from defaults)
    vocab_size = 96
    block_size = 8     # T
    n_embd = 32        # C
    n_layers = 2
    n_head = 4
    B, T = 2, block_size

    key = jax.random.PRNGKey(0)
    k_params, k_idx = jax.random.split(key)
    params = init_params(k_params, vocab_size, block_size, n_embd, n_layers)
    idx = jax.random.randint(k_idx, (B, T), 0, vocab_size, dtype=jnp.int32)

    logits = forward(idx, params, n_head)           # (B, T, vocab_size), loss=None
    logits = jax.block_until_ready(logits)
    assert logits.shape == (B, T, vocab_size)

    ref = ref_forward(idx, params, n_head)
    # bf16 MXU operands with f32 accumulation => slightly looser tolerance than
    # the pure-f32 reference (errors here are ~1e-3 abs; real bugs are >=1e-1).
    np.testing.assert_allclose(np.asarray(logits), np.asarray(ref),
                               rtol=5e-2, atol=2e-2)
    print("KERNEL_OK")
</pallas_src>

<mosaic_0001>
module attributes {stable_mosaic.version = 11 : i64} {
  func.func @fused_forward_kernel(%arg0: i32, %arg1: memref<8x32xf32, #tpu.memory_space<vmem>>, %arg2: memref<2x1x32xf32, #tpu.memory_space<vmem>>, %arg3: memref<2x1x32xf32, #tpu.memory_space<vmem>>, %arg4: memref<2x4x32x8xbf16, #tpu.memory_space<vmem>>, %arg5: memref<2x4x32x8xbf16, #tpu.memory_space<vmem>>, %arg6: memref<2x4x32x8xbf16, #tpu.memory_space<vmem>>, %arg7: memref<2x4x8x32xbf16, #tpu.memory_space<vmem>>, %arg8: memref<2x1x32xf32, #tpu.memory_space<vmem>>, %arg9: memref<2x1x32xf32, #tpu.memory_space<vmem>>, %arg10: memref<2x1x32xf32, #tpu.memory_space<vmem>>, %arg11: memref<2x32x128xbf16, #tpu.memory_space<vmem>>, %arg12: memref<2x1x128xf32, #tpu.memory_space<vmem>>, %arg13: memref<2x1x128xf32, #tpu.memory_space<vmem>>, %arg14: memref<2x1x128xf32, #tpu.memory_space<vmem>>, %arg15: memref<2x128x32xbf16, #tpu.memory_space<vmem>>, %arg16: memref<2x1x32xf32, #tpu.memory_space<vmem>>, %arg17: memref<1x32xf32, #tpu.memory_space<vmem>>, %arg18: memref<1x32xf32, #tpu.memory_space<vmem>>, %arg19: memref<32x128xbf16, #tpu.memory_space<vmem>>, %arg20: memref<1x128xf32, #tpu.memory_space<vmem>>, %arg21: memref<8x128xf32, #tpu.memory_space<vmem>>) attributes {dimension_semantics = [#tpu.dimension_semantics<parallel>], iteration_bounds = array<i64: 2>, scalar_prefetch = 0 : i64, scratch_operands = 0 : i64, tpu.core_type = #tpu.core_type<tc>, window_params = [{transform_indices = @transform_0, window_bounds = array<i64: 8, 32>}, {pipeline_mode = #tpu.pipeline_mode<synchronous>, transform_indices = @transform_1, window_bounds = array<i64: 2, 1, 32>}, {pipeline_mode = #tpu.pipeline_mode<synchronous>, transform_indices = @transform_2, window_bounds = array<i64: 2, 1, 32>}, {pipeline_mode = #tpu.pipeline_mode<synchronous>, transform_indices = @transform_3, window_bounds = array<i64: 2, 4, 32, 8>}, {pipeline_mode = #tpu.pipeline_mode<synchronous>, transform_indices = @transform_4, window_bounds = array<i64: 2, 4, 32, 8>}, {pipeline_mode = #tpu.pipeline_mode<synchronous>, transform_indices = @transform_5, window_bounds = array<i64: 2, 4, 32, 8>}, {pipeline_mode = #tpu.pipeline_mode<synchronous>, transform_indices = @transform_6, window_bounds = array<i64: 2, 4, 8, 32>}, {pipeline_mode = #tpu.pipeline_mode<synchronous>, transform_indices = @transform_7, window_bounds = array<i64: 2, 1, 32>}, {pipeline_mode = #tpu.pipeline_mode<synchronous>, transform_indices = @transform_8, window_bounds = array<i64: 2, 1, 32>}, {pipeline_mode = #tpu.pipeline_mode<synchronous>, transform_indices = @transform_9, window_bounds = array<i64: 2, 1, 32>}, {pipeline_mode = #tpu.pipeline_mode<synchronous>, transform_indices = @transform_10, window_bounds = array<i64: 2, 32, 128>}, {pipeline_mode = #tpu.pipeline_mode<synchronous>, transform_indices = @transform_11, window_bounds = array<i64: 2, 1, 128>}, {pipeline_mode = #tpu.pipeline_mode<synchronous>, transform_indices = @transform_12, window_bounds = array<i64: 2, 1, 128>}, {pipeline_mode = #tpu.pipeline_mode<synchronous>, transform_indices = @transform_13, window_bounds = array<i64: 2, 1, 128>}, {pipeline_mode = #tpu.pipeline_mode<synchronous>, transform_indices = @transform_14, window_bounds = array<i64: 2, 128, 32>}, {pipeline_mode = #tpu.pipeline_mode<synchronous>, transform_indices = @transform_15, window_bounds = array<i64: 2, 1, 32>}, {pipeline_mode = #tpu.pipeline_mode<synchronous>, transform_indices = @transform_16, window_bounds = array<i64: 1, 32>}, {pipeline_mode = #tpu.pipeline_mode<synchronous>, transform_indices = @transform_17, window_bounds = array<i64: 1, 32>}, {pipeline_mode = #tpu.pipeline_mode<synchronous>, transform_indices = @transform_18, window_bounds = array<i64: 32, 128>}, {pipeline_mode = #tpu.pipeline_mode<synchronous>, transform_indices = @transform_19, window_bounds = array<i64: 1, 128>}, {transform_indices = @transform_20, window_bounds = array<i64: 8, 128>}]} {
    %c0 = arith.constant 0 : index
    %c0_0 = arith.constant 0 : index
    %0 = vector.load %arg1[%c0, %c0_0] : memref<8x32xf32, #tpu.memory_space<vmem>>, vector<8x32xf32>
    %1 = tpu.iota {dimensions = array<i32: 0>} : vector<8x8xi32>
    %2 = tpu.iota {dimensions = array<i32: 1>} : vector<8x8xi32>
    %3 = arith.cmpi sle, %2, %1 : vector<8x8xi32>
    %4 = vector.shape_cast %3 : vector<8x8xi1> to vector<1x8x8xi1>
    %5 = vector.broadcast %4 : vector<1x8x8xi1> to vector<4x8x8xi1>
    %c0_1 = arith.constant 0 : index
    %c0_2 = arith.constant 0 : index
    %c0_3 = arith.constant 0 : index
    %6 = vector.load %arg2[%c0_1, %c0_2, %c0_3] : memref<2x1x32xf32, #tpu.memory_space<vmem>>, vector<1x1x32xf32>
    %7 = vector.shape_cast %6 : vector<1x1x32xf32> to vector<1x32xf32>
    %c0_4 = arith.constant 0 : index
    %c0_5 = arith.constant 0 : index
    %c0_6 = arith.constant 0 : index
    %8 = vector.load %arg3[%c0_4, %c0_5, %c0_6] : memref<2x1x32xf32, #tpu.memory_space<vmem>>, vector<1x1x32xf32>
    %9 = vector.shape_cast %8 : vector<1x1x32xf32> to vector<1x32xf32>
    %cst = arith.constant dense<0.000000e+00> : vector<8xf32>
    %10 = vector.multi_reduction <add>, %0, %cst [1] : vector<8x32xf32> to vector<8xf32>
    %11 = vector.shape_cast %10 : vector<8xf32> to vector<8x1xf32>
    %cst_7 = arith.constant 3.200000e+01 : f32
    %12 = vector.broadcast %cst_7 : f32 to vector<8x1xf32>
    %13 = arith.divf %11, %12 : vector<8x1xf32>
    %14 = vector.broadcast %13 : vector<8x1xf32> to vector<8x32xf32>
    %15 = arith.subf %0, %14 : vector<8x32xf32>
    %16 = arith.mulf %15, %15 : vector<8x32xf32>
    %cst_8 = arith.constant dense<0.000000e+00> : vector<8xf32>
    %17 = vector.multi_reduction <add>, %16, %cst_8 [1] : vector<8x32xf32> to vector<8xf32>
    %18 = vector.shape_cast %17 : vector<8xf32> to vector<8x1xf32>
    %cst_9 = arith.constant 3.200000e+01 : f32
    %19 = vector.broadcast %cst_9 : f32 to vector<8x1xf32>
    %20 = arith.divf %18, %19 : vector<8x1xf32>
    %21 = vector.broadcast %13 : vector<8x1xf32> to vector<8x32xf32>
    %22 = arith.subf %0, %21 : vector<8x32xf32>
    %cst_10 = arith.constant 9.99999974E-6 : f32
    %23 = vector.broadcast %cst_10 : f32 to vector<8x1xf32>
    %24 = arith.addf %20, %23 : vector<8x1xf32>
    %25 = math.rsqrt %24 : vector<8x1xf32>
    %26 = vector.broadcast %25 : vector<8x1xf32> to vector<8x32xf32>
    %27 = arith.mulf %22, %26 : vector<8x32xf32>
    %28 = vector.broadcast %7 : vector<1x32xf32> to vector<8x32xf32>
    %29 = arith.mulf %27, %28 : vector<8x32xf32>
    %30 = vector.broadcast %9 : vector<1x32xf32> to vector<8x32xf32>
    %31 = arith.addf %29, %30 : vector<8x32xf32>
    %c0_11 = arith.constant 0 : index
    %c0_12 = arith.constant 0 : index
    %c0_13 = arith.constant 0 : index
    %c0_14 = arith.constant 0 : index
    %32 = vector.load %arg4[%c0_11, %c0_12, %c0_13, %c0_14] : memref<2x4x32x8xbf16, #tpu.memory_space<vmem>>, vector<1x4x32x8xbf16>
    %33 = vector.shape_cast %32 : vector<1x4x32x8xbf16> to vector<4x32x8xbf16>
    %c0_15 = arith.constant 0 : index
    %c0_16 = arith.constant 0 : index
    %c0_17 = arith.constant 0 : index
    %c0_18 = arith.constant 0 : index
    %34 = vector.load %arg5[%c0_15, %c0_16, %c0_17, %c0_18] : memref<2x4x32x8xbf16, #tpu.memory_space<vmem>>, vector<1x4x32x8xbf16>
    %35 = vector.shape_cast %34 : vector<1x4x32x8xbf16> to vector<4x32x8xbf16>
    %c0_19 = arith.constant 0 : index
    %c0_20 = arith.constant 0 : index
    %c0_21 = arith.constant 0 : index
    %c0_22 = arith.constant 0 : index
    %36 = vector.load %arg6[%c0_19, %c0_20, %c0_21, %c0_22] : memref<2x4x32x8xbf16, #tpu.memory_space<vmem>>, vector<1x4x32x8xbf16>
    %37 = vector.shape_cast %36 : vector<1x4x32x8xbf16> to vector<4x32x8xbf16>
    %c0_23 = arith.constant 0 : index
    %c0_24 = arith.constant 0 : index
    %c0_25 = arith.constant 0 : index
    %c0_26 = arith.constant 0 : index
    %38 = vector.load %arg7[%c0_23, %c0_24, %c0_25, %c0_26] : memref<2x4x8x32xbf16, #tpu.memory_space<vmem>>, vector<1x4x8x32xbf16>
    %39 = vector.shape_cast %38 : vector<1x4x8x32xbf16> to vector<4x8x32xbf16>
    %40 = arith.truncf %31 : vector<8x32xf32> to vector<8x32xbf16>
    %41 = vector.shape_cast %40 : vector<8x32xbf16> to vector<1x8x32xbf16>
    %42 = vector.shape_cast %41 : vector<1x8x32xbf16> to vector<1x8x32xbf16>
    %43 = vector.broadcast %42 : vector<1x8x32xbf16> to vector<4x8x32xbf16>
    "tpu.trace_start"() <{level = 10 : i32, message = "htc,hcd->htd"}> : () -> ()
    %cst_27 = arith.constant dense<0.000000e+00> : vector<4x8x8xf32>
    %44 = tpu.matmul %43, %33, %cst_27 {dimension_numbers = #tpu.dot_dimension_numbers<[2], [1], [1], [2], [0, 0, 0, 1, 1, 2], [0], [0]>} : vector<4x8x32xbf16>, vector<4x32x8xbf16>, vector<4x8x8xf32> -> vector<4x8x8xf32>
    %cst_28 = arith.constant dense<0.000000e+00> : vector<4x8x8xf32>
    %45 = tpu.matmul %43, %35, %cst_28 {dimension_numbers = #tpu.dot_dimension_numbers<[2], [1], [1], [2], [0, 0, 0, 1, 1, 2], [0], [0]>} : vector<4x8x32xbf16>, vector<4x32x8xbf16>, vector<4x8x8xf32> -> vector<4x8x8xf32>
    %cst_29 = arith.constant dense<0.000000e+00> : vector<4x8x8xf32>
    %46 = tpu.matmul %43, %37, %cst_29 {dimension_numbers = #tpu.dot_dimension_numbers<[2], [1], [1], [2], [0, 0, 0, 1, 1, 2], [0], [0]>} : vector<4x8x32xbf16>, vector<4x32x8xbf16>, vector<4x8x8xf32> -> vector<4x8x8xf32>
    "tpu.trace_stop"() : () -> ()
    %47 = arith.truncf %44 : vector<4x8x8xf32> to vector<4x8x8xbf16>
    %48 = arith.truncf %45 : vector<4x8x8xf32> to vector<4x8x8xbf16>
    "tpu.trace_start"() <{level = 10 : i32, message = "htd,hsd->hts"}> : () -> ()
    %cst_30 = arith.constant dense<0.000000e+00> : vector<4x8x8xf32>
    %49 = tpu.matmul %47, %48, %cst_30 {dimension_numbers = #tpu.dot_dimension_numbers<[2], [2], [1], [1], [0, 0, 0, 1, 1, 1], [0], [0]>} : vector<4x8x8xbf16>, vector<4x8x8xbf16>, vector<4x8x8xf32> -> vector<4x8x8xf32>
    "tpu.trace_stop"() : () -> ()
    %cst_31 = arith.constant 0.176776692 : f32
    %50 = vector.broadcast %cst_31 : f32 to vector<4x8x8xf32>
    %51 = arith.mulf %49, %50 : vector<4x8x8xf32>
    %cst_32 = arith.constant 0xFF800000 : f32
    %52 = vector.broadcast %cst_32 : f32 to vector<4x8x8xf32>
    %53 = arith.select %5, %51, %52 : vector<4x8x8xi1>, vector<4x8x8xf32>
    %cst_33 = arith.constant dense<0xFF800000> : vector<4x8xf32>
    %54 = vector.multi_reduction <maximumf>, %53, %cst_33 [2] : vector<4x8x8xf32> to vector<4x8xf32>
    %55 = vector.shape_cast %54 : vector<4x8xf32> to vector<4x8x1xf32>
    %56 = vector.broadcast %55 : vector<4x8x1xf32> to vector<4x8x8xf32>
    %57 = arith.subf %53, %56 : vector<4x8x8xf32>
    %58 = math.exp %57 : vector<4x8x8xf32>
    %cst_34 = arith.constant dense<0.000000e+00> : vector<4x8xf32>
    %59 = vector.multi_reduction <add>, %58, %cst_34 [2] : vector<4x8x8xf32> to vector<4x8xf32>
    %60 = vector.shape_cast %59 : vector<4x8xf32> to vector<4x8x1xf32>
    %61 = tpu.reciprocal %60 {approx = true} : vector<4x8x1xf32> -> vector<4x8x1xf32>
    %62 = vector.broadcast %61 : vector<4x8x1xf32> to vector<4x8x8xf32>
    %63 = arith.mulf %58, %62 : vector<4x8x8xf32>
    %64 = arith.truncf %63 : vector<4x8x8xf32> to vector<4x8x8xbf16>
    %65 = arith.truncf %46 : vector<4x8x8xf32> to vector<4x8x8xbf16>
    "tpu.trace_start"() <{level = 10 : i32, message = "hts,hsd->htd"}> : () -> ()
    %cst_35 = arith.constant dense<0.000000e+00> : vector<4x8x8xf32>
    %66 = tpu.matmul %64, %65, %cst_35 {dimension_numbers = #tpu.dot_dimension_numbers<[2], [1], [1], [2], [0, 0, 0, 1, 1, 2], [0], [0]>} : vector<4x8x8xbf16>, vector<4x8x8xbf16>, vector<4x8x8xf32> -> vector<4x8x8xf32>
    "tpu.trace_stop"() : () -> ()
    %67 = arith.truncf %66 : vector<4x8x8xf32> to vector<4x8x8xbf16>
    "tpu.trace_start"() <{level = 10 : i32, message = "htd,hdc->htc"}> : () -> ()
    %cst_36 = arith.constant dense<0.000000e+00> : vector<4x8x32xf32>
    %68 = tpu.matmul %67, %39, %cst_36 {dimension_numbers = #tpu.dot_dimension_numbers<[2], [1], [1], [2], [0, 0, 0, 1, 1, 2], [0], [0]>} : vector<4x8x8xbf16>, vector<4x8x32xbf16>, vector<4x8x32xf32> -> vector<4x8x32xf32>
    "tpu.trace_stop"() : () -> ()
    %cst_37 = arith.constant dense<0.000000e+00> : vector<8x32xf32>
    %69 = vector.multi_reduction <add>, %68, %cst_37 [0] : vector<4x8x32xf32> to vector<8x32xf32>
    %c0_38 = arith.constant 0 : index
    %c0_39 = arith.constant 0 : index
    %c0_40 = arith.constant 0 : index
    %70 = vector.load %arg8[%c0_38, %c0_39, %c0_40] : memref<2x1x32xf32, #tpu.memory_space<vmem>>, vector<1x1x32xf32>
    %71 = vector.shape_cast %70 : vector<1x1x32xf32> to vector<1x32xf32>
    %72 = vector.broadcast %71 : vector<1x32xf32> to vector<8x32xf32>
    %73 = arith.addf %69, %72 : vector<8x32xf32>
    %74 = arith.addf %0, %73 : vector<8x32xf32>
    %c0_41 = arith.constant 0 : index
    %c0_42 = arith.constant 0 : index
    %c0_43 = arith.constant 0 : index
    %75 = vector.load %arg9[%c0_41, %c0_42, %c0_43] : memref<2x1x32xf32, #tpu.memory_space<vmem>>, vector<1x1x32xf32>
    %76 = vector.shape_cast %75 : vector<1x1x32xf32> to vector<1x32xf32>
    %c0_44 = arith.constant 0 : index
    %c0_45 = arith.constant 0 : index
    %c0_46 = arith.constant 0 : index
    %77 = vector.load %arg10[%c0_44, %c0_45, %c0_46] : memref<2x1x32xf32, #tpu.memory_space<vmem>>, vector<1x1x32xf32>
    %78 = vector.shape_cast %77 : vector<1x1x32xf32> to vector<1x32xf32>
    %cst_47 = arith.constant dense<0.000000e+00> : vector<8xf32>
    %79 = vector.multi_reduction <add>, %74, %cst_47 [1] : vector<8x32xf32> to vector<8xf32>
    %80 = vector.shape_cast %79 : vector<8xf32> to vector<8x1xf32>
    %cst_48 = arith.constant 3.200000e+01 : f32
    %81 = vector.broadcast %cst_48 : f32 to vector<8x1xf32>
    %82 = arith.divf %80, %81 : vector<8x1xf32>
    %83 = vector.broadcast %82 : vector<8x1xf32> to vector<8x32xf32>
    %84 = arith.subf %74, %83 : vector<8x32xf32>
    %85 = arith.mulf %84, %84 : vector<8x32xf32>
    %cst_49 = arith.constant dense<0.000000e+00> : vector<8xf32>
    %86 = vector.multi_reduction <add>, %85, %cst_49 [1] : vector<8x32xf32> to vector<8xf32>
    %87 = vector.shape_cast %86 : vector<8xf32> to vector<8x1xf32>
    %cst_50 = arith.constant 3.200000e+01 : f32
    %88 = vector.broadcast %cst_50 : f32 to vector<8x1xf32>
    %89 = arith.divf %87, %88 : vector<8x1xf32>
    %90 = vector.broadcast %82 : vector<8x1xf32> to vector<8x32xf32>
    %91 = arith.subf %74, %90 : vector<8x32xf32>
    %cst_51 = arith.constant 9.99999974E-6 : f32
    %92 = vector.broadcast %cst_51 : f32 to vector<8x1xf32>
    %93 = arith.addf %89, %92 : vector<8x1xf32>
    %94 = math.rsqrt %93 : vector<8x1xf32>
    %95 = vector.broadcast %94 : vector<8x1xf32> to vector<8x32xf32>
    %96 = arith.mulf %91, %95 : vector<8x32xf32>
    %97 = vector.broadcast %76 : vector<1x32xf32> to vector<8x32xf32>
    %98 = arith.mulf %96, %97 : vector<8x32xf32>
    %99 = vector.broadcast %78 : vector<1x32xf32> to vector<8x32xf32>
    %100 = arith.addf %98, %99 : vector<8x32xf32>
    %101 = arith.truncf %100 : vector<8x32xf32> to vector<8x32xbf16>
    %c0_52 = arith.constant 0 : index
    %c0_53 = arith.constant 0 : index
    %c0_54 = arith.constant 0 : index
    %102 = vector.load %arg11[%c0_52, %c0_53, %c0_54] : memref<2x32x128xbf16, #tpu.memory_space<vmem>>, vector<1x32x128xbf16>
    %103 = vector.shape_cast %102 : vector<1x32x128xbf16> to vector<32x128xbf16>
    %cst_55 = arith.constant dense<0.000000e+00> : vector<8x128xf32>
    %104 = tpu.matmul %101, %103, %cst_55 {dimension_numbers = #tpu.dot_dimension_numbers<[1], [0], [0], [1], [0, 0, 1, 1], [], []>} : vector<8x32xbf16>, vector<32x128xbf16>, vector<8x128xf32> -> vector<8x128xf32>
    %c0_56 = arith.constant 0 : index
    %c0_57 = arith.constant 0 : index
    %c0_58 = arith.constant 0 : index
    %105 = vector.load %arg12[%c0_56, %c0_57, %c0_58] : memref<2x1x128xf32, #tpu.memory_space<vmem>>, vector<1x1x128xf32>
    %106 = vector.shape_cast %105 : vector<1x1x128xf32> to vector<1x128xf32>
    %107 = vector.broadcast %106 : vector<1x128xf32> to vector<8x128xf32>
    %108 = arith.addf %104, %107 : vector<8x128xf32>
    %c0_59 = arith.constant 0 : index
    %c0_60 = arith.constant 0 : index
    %c0_61 = arith.constant 0 : index
    %109 = vector.load %arg13[%c0_59, %c0_60, %c0_61] : memref<2x1x128xf32, #tpu.memory_space<vmem>>, vector<1x1x128xf32>
    %110 = vector.shape_cast %109 : vector<1x1x128xf32> to vector<1x128xf32>
    %c0_62 = arith.constant 0 : index
    %c0_63 = arith.constant 0 : index
    %c0_64 = arith.constant 0 : index
    %111 = vector.load %arg14[%c0_62, %c0_63, %c0_64] : memref<2x1x128xf32, #tpu.memory_space<vmem>>, vector<1x1x128xf32>
    %112 = vector.shape_cast %111 : vector<1x1x128xf32> to vector<1x128xf32>
    %cst_65 = arith.constant dense<0.000000e+00> : vector<8xf32>
    %113 = vector.multi_reduction <add>, %108, %cst_65 [1] : vector<8x128xf32> to vector<8xf32>
    %114 = vector.shape_cast %113 : vector<8xf32> to vector<8x1xf32>
    %cst_66 = arith.constant 1.280000e+02 : f32
    %115 = vector.broadcast %cst_66 : f32 to vector<8x1xf32>
    %116 = arith.divf %114, %115 : vector<8x1xf32>
    %117 = vector.broadcast %116 : vector<8x1xf32> to vector<8x128xf32>
    %118 = arith.subf %108, %117 : vector<8x128xf32>
    %119 = arith.mulf %118, %118 : vector<8x128xf32>
    %cst_67 = arith.constant dense<0.000000e+00> : vector<8xf32>
    %120 = vector.multi_reduction <add>, %119, %cst_67 [1] : vector<8x128xf32> to vector<8xf32>
    %121 = vector.shape_cast %120 : vector<8xf32> to vector<8x1xf32>
    %cst_68 = arith.constant 1.280000e+02 : f32
    %122 = vector.broadcast %cst_68 : f32 to vector<8x1xf32>
    %123 = arith.divf %121, %122 : vector<8x1xf32>
    %124 = vector.broadcast %116 : vector<8x1xf32> to vector<8x128xf32>
    %125 = arith.subf %108, %124 : vector<8x128xf32>
    %cst_69 = arith.constant 9.99999974E-6 : f32
    %126 = vector.broadcast %cst_69 : f32 to vector<8x1xf32>
    %127 = arith.addf %123, %126 : vector<8x1xf32>
    %128 = math.rsqrt %127 : vector<8x1xf32>
    %129 = vector.broadcast %128 : vector<8x1xf32> to vector<8x128xf32>
    %130 = arith.mulf %125, %129 : vector<8x128xf32>
    %131 = vector.broadcast %110 : vector<1x128xf32> to vector<8x128xf32>
    %132 = arith.mulf %130, %131 : vector<8x128xf32>
    %133 = vector.broadcast %112 : vector<1x128xf32> to vector<8x128xf32>
    %134 = arith.addf %132, %133 : vector<8x128xf32>
    %cst_70 = arith.constant 0.000000e+00 : f32
    %135 = vector.broadcast %cst_70 : f32 to vector<8x128xf32>
    %136 = arith.maximumf %134, %135 : vector<8x128xf32>
    %137 = arith.truncf %136 : vector<8x128xf32> to vector<8x128xbf16>
    %c0_71 = arith.constant 0 : index
    %c0_72 = arith.constant 0 : index
    %c0_73 = arith.constant 0 : index
    %138 = vector.load %arg15[%c0_71, %c0_72, %c0_73] : memref<2x128x32xbf16, #tpu.memory_space<vmem>>, vector<1x128x32xbf16>
    %139 = vector.shape_cast %138 : vector<1x128x32xbf16> to vector<128x32xbf16>
    %cst_74 = arith.constant dense<0.000000e+00> : vector<8x32xf32>
    %140 = tpu.matmul %137, %139, %cst_74 {dimension_numbers = #tpu.dot_dimension_numbers<[1], [0], [0], [1], [0, 0, 1, 1], [], []>} : vector<8x128xbf16>, vector<128x32xbf16>, vector<8x32xf32> -> vector<8x32xf32>
    %c0_75 = arith.constant 0 : index
    %c0_76 = arith.constant 0 : index
    %c0_77 = arith.constant 0 : index
    %141 = vector.load %arg16[%c0_75, %c0_76, %c0_77] : memref<2x1x32xf32, #tpu.memory_space<vmem>>, vector<1x1x32xf32>
    %142 = vector.shape_cast %141 : vector<1x1x32xf32> to vector<1x32xf32>
    %143 = vector.broadcast %142 : vector<1x32xf32> to vector<8x32xf32>
    %144 = arith.addf %140, %143 : vector<8x32xf32>
    %145 = arith.addf %74, %144 : vector<8x32xf32>
    %c1 = arith.constant 1 : index
    %c0_78 = arith.constant 0 : index
    %c0_79 = arith.constant 0 : index
    %146 = vector.load %arg2[%c1, %c0_78, %c0_79] : memref<2x1x32xf32, #tpu.memory_space<vmem>>, vector<1x1x32xf32>
    %147 = vector.shape_cast %146 : vector<1x1x32xf32> to vector<1x32xf32>
    %c1_80 = arith.constant 1 : index
    %c0_81 = arith.constant 0 : index
    %c0_82 = arith.constant 0 : index
    %148 = vector.load %arg3[%c1_80, %c0_81, %c0_82] : memref<2x1x32xf32, #tpu.memory_space<vmem>>, vector<1x1x32xf32>
    %149 = vector.shape_cast %148 : vector<1x1x32xf32> to vector<1x32xf32>
    %cst_83 = arith.constant dense<0.000000e+00> : vector<8xf32>
    %150 = vector.multi_reduction <add>, %145, %cst_83 [1] : vector<8x32xf32> to vector<8xf32>
    %151 = vector.shape_cast %150 : vector<8xf32> to vector<8x1xf32>
    %cst_84 = arith.constant 3.200000e+01 : f32
    %152 = vector.broadcast %cst_84 : f32 to vector<8x1xf32>
    %153 = arith.divf %151, %152 : vector<8x1xf32>
    %154 = vector.broadcast %153 : vector<8x1xf32> to vector<8x32xf32>
    %155 = arith.subf %145, %154 : vector<8x32xf32>
    %156 = arith.mulf %155, %155 : vector<8x32xf32>
    %cst_85 = arith.constant dense<0.000000e+00> : vector<8xf32>
    %157 = vector.multi_reduction <add>, %156, %cst_85 [1] : vector<8x32xf32> to vector<8xf32>
    %158 = vector.shape_cast %157 : vector<8xf32> to vector<8x1xf32>
    %cst_86 = arith.constant 3.200000e+01 : f32
    %159 = vector.broadcast %cst_86 : f32 to vector<8x1xf32>
    %160 = arith.divf %158, %159 : vector<8x1xf32>
    %161 = vector.broadcast %153 : vector<8x1xf32> to vector<8x32xf32>
    %162 = arith.subf %145, %161 : vector<8x32xf32>
    %cst_87 = arith.constant 9.99999974E-6 : f32
    %163 = vector.broadcast %cst_87 : f32 to vector<8x1xf32>
    %164 = arith.addf %160, %163 : vector<8x1xf32>
    %165 = math.rsqrt %164 : vector<8x1xf32>
    %166 = vector.broadcast %165 : vector<8x1xf32> to vector<8x32xf32>
    %167 = arith.mulf %162, %166 : vector<8x32xf32>
    %168 = vector.broadcast %147 : vector<1x32xf32> to vector<8x32xf32>
    %169 = arith.mulf %167, %168 : vector<8x32xf32>
    %170 = vector.broadcast %149 : vector<1x32xf32> to vector<8x32xf32>
    %171 = arith.addf %169, %170 : vector<8x32xf32>
    %c1_88 = arith.constant 1 : index
    %c0_89 = arith.constant 0 : index
    %c0_90 = arith.constant 0 : index
    %c0_91 = arith.constant 0 : index
    %172 = vector.load %arg4[%c1_88, %c0_89, %c0_90, %c0_91] : memref<2x4x32x8xbf16, #tpu.memory_space<vmem>>, vector<1x4x32x8xbf16>
    %173 = vector.shape_cast %172 : vector<1x4x32x8xbf16> to vector<4x32x8xbf16>
    %c1_92 = arith.constant 1 : index
    %c0_93 = arith.constant 0 : index
    %c0_94 = arith.constant 0 : index
    %c0_95 = arith.constant 0 : index
    %174 = vector.load %arg5[%c1_92, %c0_93, %c0_94, %c0_95] : memref<2x4x32x8xbf16, #tpu.memory_space<vmem>>, vector<1x4x32x8xbf16>
    %175 = vector.shape_cast %174 : vector<1x4x32x8xbf16> to vector<4x32x8xbf16>
    %c1_96 = arith.constant 1 : index
    %c0_97 = arith.constant 0 : index
    %c0_98 = arith.constant 0 : index
    %c0_99 = arith.constant 0 : index
    %176 = vector.load %arg6[%c1_96, %c0_97, %c0_98, %c0_99] : memref<2x4x32x8xbf16, #tpu.memory_space<vmem>>, vector<1x4x32x8xbf16>
    %177 = vector.shape_cast %176 : vector<1x4x32x8xbf16> to vector<4x32x8xbf16>
    %c1_100 = arith.constant 1 : index
    %c0_101 = arith.constant 0 : index
    %c0_102 = arith.constant 0 : index
    %c0_103 = arith.constant 0 : index
    %178 = vector.load %arg7[%c1_100, %c0_101, %c0_102, %c0_103] : memref<2x4x8x32xbf16, #tpu.memory_space<vmem>>, vector<1x4x8x32xbf16>
    %179 = vector.shape_cast %178 : vector<1x4x8x32xbf16> to vector<4x8x32xbf16>
    %180 = arith.truncf %171 : vector<8x32xf32> to vector<8x32xbf16>
    %181 = vector.shape_cast %180 : vector<8x32xbf16> to vector<1x8x32xbf16>
    %182 = vector.shape_cast %181 : vector<1x8x32xbf16> to vector<1x8x32xbf16>
    %183 = vector.broadcast %182 : vector<1x8x32xbf16> to vector<4x8x32xbf16>
    "tpu.trace_start"() <{level = 10 : i32, message = "htc,hcd->htd"}> : () -> ()
    %cst_104 = arith.constant dense<0.000000e+00> : vector<4x8x8xf32>
    %184 = tpu.matmul %183, %173, %cst_104 {dimension_numbers = #tpu.dot_dimension_numbers<[2], [1], [1], [2], [0, 0, 0, 1, 1, 2], [0], [0]>} : vector<4x8x32xbf16>, vector<4x32x8xbf16>, vector<4x8x8xf32> -> vector<4x8x8xf32>
    %cst_105 = arith.constant dense<0.000000e+00> : vector<4x8x8xf32>
    %185 = tpu.matmul %183, %175, %cst_105 {dimension_numbers = #tpu.dot_dimension_numbers<[2], [1], [1], [2], [0, 0, 0, 1, 1, 2], [0], [0]>} : vector<4x8x32xbf16>, vector<4x32x8xbf16>, vector<4x8x8xf32> -> vector<4x8x8xf32>
    %cst_106 = arith.constant dense<0.000000e+00> : vector<4x8x8xf32>
    %186 = tpu.matmul %183, %177, %cst_106 {dimension_numbers = #tpu.dot_dimension_numbers<[2], [1], [1], [2], [0, 0, 0, 1, 1, 2], [0], [0]>} : vector<4x8x32xbf16>, vector<4x32x8xbf16>, vector<4x8x8xf32> -> vector<4x8x8xf32>
    "tpu.trace_stop"() : () -> ()
    %187 = arith.truncf %184 : vector<4x8x8xf32> to vector<4x8x8xbf16>
    %188 = arith.truncf %185 : vector<4x8x8xf32> to vector<4x8x8xbf16>
    "tpu.trace_start"() <{level = 10 : i32, message = "htd,hsd->hts"}> : () -> ()
    %cst_107 = arith.constant dense<0.000000e+00> : vector<4x8x8xf32>
    %189 = tpu.matmul %187, %188, %cst_107 {dimension_numbers = #tpu.dot_dimension_numbers<[2], [2], [1], [1], [0, 0, 0, 1, 1, 1], [0], [0]>} : vector<4x8x8xbf16>, vector<4x8x8xbf16>, vector<4x8x8xf32> -> vector<4x8x8xf32>
    "tpu.trace_stop"() : () -> ()
    %cst_108 = arith.constant 0.176776692 : f32
    %190 = vector.broadcast %cst_108 : f32 to vector<4x8x8xf32>
    %191 = arith.mulf %189, %190 : vector<4x8x8xf32>
    %cst_109 = arith.constant 0xFF800000 : f32
    %192 = vector.broadcast %cst_109 : f32 to vector<4x8x8xf32>
    %193 = arith.select %5, %191, %192 : vector<4x8x8xi1>, vector<4x8x8xf32>
    %cst_110 = arith.constant dense<0xFF800000> : vector<4x8xf32>
    %194 = vector.multi_reduction <maximumf>, %193, %cst_110 [2] : vector<4x8x8xf32> to vector<4x8xf32>
    %195 = vector.shape_cast %194 : vector<4x8xf32> to vector<4x8x1xf32>
    %196 = vector.broadcast %195 : vector<4x8x1xf32> to vector<4x8x8xf32>
    %197 = arith.subf %193, %196 : vector<4x8x8xf32>
    %198 = math.exp %197 : vector<4x8x8xf32>
    %cst_111 = arith.constant dense<0.000000e+00> : vector<4x8xf32>
    %199 = vector.multi_reduction <add>, %198, %cst_111 [2] : vector<4x8x8xf32> to vector<4x8xf32>
    %200 = vector.shape_cast %199 : vector<4x8xf32> to vector<4x8x1xf32>
    %201 = tpu.reciprocal %200 {approx = true} : vector<4x8x1xf32> -> vector<4x8x1xf32>
    %202 = vector.broadcast %201 : vector<4x8x1xf32> to vector<4x8x8xf32>
    %203 = arith.mulf %198, %202 : vector<4x8x8xf32>
    %204 = arith.truncf %203 : vector<4x8x8xf32> to vector<4x8x8xbf16>
    %205 = arith.truncf %186 : vector<4x8x8xf32> to vector<4x8x8xbf16>
    "tpu.trace_start"() <{level = 10 : i32, message = "hts,hsd->htd"}> : () -> ()
    %cst_112 = arith.constant dense<0.000000e+00> : vector<4x8x8xf32>
    %206 = tpu.matmul %204, %205, %cst_112 {dimension_numbers = #tpu.dot_dimension_numbers<[2], [1], [1], [2], [0, 0, 0, 1, 1, 2], [0], [0]>} : vector<4x8x8xbf16>, vector<4x8x8xbf16>, vector<4x8x8xf32> -> vector<4x8x8xf32>
    "tpu.trace_stop"() : () -> ()
    %207 = arith.truncf %206 : vector<4x8x8xf32> to vector<4x8x8xbf16>
    "tpu.trace_start"() <{level = 10 : i32, message = "htd,hdc->htc"}> : () -> ()
    %cst_113 = arith.constant dense<0.000000e+00> : vector<4x8x32xf32>
    %208 = tpu.matmul %207, %179, %cst_113 {dimension_numbers = #tpu.dot_dimension_numbers<[2], [1], [1], [2], [0, 0, 0, 1, 1, 2], [0], [0]>} : vector<4x8x8xbf16>, vector<4x8x32xbf16>, vector<4x8x32xf32> -> vector<4x8x32xf32>
    "tpu.trace_stop"() : () -> ()
    %cst_114 = arith.constant dense<0.000000e+00> : vector<8x32xf32>
    %209 = vector.multi_reduction <add>, %208, %cst_114 [0] : vector<4x8x32xf32> to vector<8x32xf32>
    %c1_115 = arith.constant 1 : index
    %c0_116 = arith.constant 0 : index
    %c0_117 = arith.constant 0 : index
    %210 = vector.load %arg8[%c1_115, %c0_116, %c0_117] : memref<2x1x32xf32, #tpu.memory_space<vmem>>, vector<1x1x32xf32>
    %211 = vector.shape_cast %210 : vector<1x1x32xf32> to vector<1x32xf32>
    %212 = vector.broadcast %211 : vector<1x32xf32> to vector<8x32xf32>
    %213 = arith.addf %209, %212 : vector<8x32xf32>
    %214 = arith.addf %145, %213 : vector<8x32xf32>
    %c1_118 = arith.constant 1 : index
    %c0_119 = arith.constant 0 : index
    %c0_120 = arith.constant 0 : index
    %215 = vector.load %arg9[%c1_118, %c0_119, %c0_120] : memref<2x1x32xf32, #tpu.memory_space<vmem>>, vector<1x1x32xf32>
    %216 = vector.shape_cast %215 : vector<1x1x32xf32> to vector<1x32xf32>
    %c1_121 = arith.constant 1 : index
    %c0_122 = arith.constant 0 : index
    %c0_123 = arith.constant 0 : index
    %217 = vector.load %arg10[%c1_121, %c0_122, %c0_123] : memref<2x1x32xf32, #tpu.memory_space<vmem>>, vector<1x1x32xf32>
    %218 = vector.shape_cast %217 : vector<1x1x32xf32> to vector<1x32xf32>
    %cst_124 = arith.constant dense<0.000000e+00> : vector<8xf32>
    %219 = vector.multi_reduction <add>, %214, %cst_124 [1] : vector<8x32xf32> to vector<8xf32>
    %220 = vector.shape_cast %219 : vector<8xf32> to vector<8x1xf32>
    %cst_125 = arith.constant 3.200000e+01 : f32
    %221 = vector.broadcast %cst_125 : f32 to vector<8x1xf32>
    %222 = arith.divf %220, %221 : vector<8x1xf32>
    %223 = vector.broadcast %222 : vector<8x1xf32> to vector<8x32xf32>
    %224 = arith.subf %214, %223 : vector<8x32xf32>
    %225 = arith.mulf %224, %224 : vector<8x32xf32>
    %cst_126 = arith.constant dense<0.000000e+00> : vector<8xf32>
    %226 = vector.multi_reduction <add>, %225, %cst_126 [1] : vector<8x32xf32> to vector<8xf32>
    %227 = vector.shape_cast %226 : vector<8xf32> to vector<8x1xf32>
    %cst_127 = arith.constant 3.200000e+01 : f32
    %228 = vector.broadcast %cst_127 : f32 to vector<8x1xf32>
    %229 = arith.divf %227, %228 : vector<8x1xf32>
    %230 = vector.broadcast %222 : vector<8x1xf32> to vector<8x32xf32>
    %231 = arith.subf %214, %230 : vector<8x32xf32>
    %cst_128 = arith.constant 9.99999974E-6 : f32
    %232 = vector.broadcast %cst_128 : f32 to vector<8x1xf32>
    %233 = arith.addf %229, %232 : vector<8x1xf32>
    %234 = math.rsqrt %233 : vector<8x1xf32>
    %235 = vector.broadcast %234 : vector<8x1xf32> to vector<8x32xf32>
    %236 = arith.mulf %231, %235 : vector<8x32xf32>
    %237 = vector.broadcast %216 : vector<1x32xf32> to vector<8x32xf32>
    %238 = arith.mulf %236, %237 : vector<8x32xf32>
    %239 = vector.broadcast %218 : vector<1x32xf32> to vector<8x32xf32>
    %240 = arith.addf %238, %239 : vector<8x32xf32>
    %241 = arith.truncf %240 : vector<8x32xf32> to vector<8x32xbf16>
    %c1_129 = arith.constant 1 : index
    %c0_130 = arith.constant 0 : index
    %c0_131 = arith.constant 0 : index
    %242 = vector.load %arg11[%c1_129, %c0_130, %c0_131] : memref<2x32x128xbf16, #tpu.memory_space<vmem>>, vector<1x32x128xbf16>
    %243 = vector.shape_cast %242 : vector<1x32x128xbf16> to vector<32x128xbf16>
    %cst_132 = arith.constant dense<0.000000e+00> : vector<8x128xf32>
    %244 = tpu.matmul %241, %243, %cst_132 {dimension_numbers = #tpu.dot_dimension_numbers<[1], [0], [0], [1], [0, 0, 1, 1], [], []>} : vector<8x32xbf16>, vector<32x128xbf16>, vector<8x128xf32> -> vector<8x128xf32>
    %c1_133 = arith.constant 1 : index
    %c0_134 = arith.constant 0 : index
    %c0_135 = arith.constant 0 : index
    %245 = vector.load %arg12[%c1_133, %c0_134, %c0_135] : memref<2x1x128xf32, #tpu.memory_space<vmem>>, vector<1x1x128xf32>
    %246 = vector.shape_cast %245 : vector<1x1x128xf32> to vector<1x128xf32>
    %247 = vector.broadcast %246 : vector<1x128xf32> to vector<8x128xf32>
    %248 = arith.addf %244, %247 : vector<8x128xf32>
    %c1_136 = arith.constant 1 : index
    %c0_137 = arith.constant 0 : index
    %c0_138 = arith.constant 0 : index
    %249 = vector.load %arg13[%c1_136, %c0_137, %c0_138] : memref<2x1x128xf32, #tpu.memory_space<vmem>>, vector<1x1x128xf32>
    %250 = vector.shape_cast %249 : vector<1x1x128xf32> to vector<1x128xf32>
    %c1_139 = arith.constant 1 : index
    %c0_140 = arith.constant 0 : index
    %c0_141 = arith.constant 0 : index
    %251 = vector.load %arg14[%c1_139, %c0_140, %c0_141] : memref<2x1x128xf32, #tpu.memory_space<vmem>>, vector<1x1x128xf32>
    %252 = vector.shape_cast %251 : vector<1x1x128xf32> to vector<1x128xf32>
    %cst_142 = arith.constant dense<0.000000e+00> : vector<8xf32>
    %253 = vector.multi_reduction <add>, %248, %cst_142 [1] : vector<8x128xf32> to vector<8xf32>
    %254 = vector.shape_cast %253 : vector<8xf32> to vector<8x1xf32>
    %cst_143 = arith.constant 1.280000e+02 : f32
    %255 = vector.broadcast %cst_143 : f32 to vector<8x1xf32>
    %256 = arith.divf %254, %255 : vector<8x1xf32>
    %257 = vector.broadcast %256 : vector<8x1xf32> to vector<8x128xf32>
    %258 = arith.subf %248, %257 : vector<8x128xf32>
    %259 = arith.mulf %258, %258 : vector<8x128xf32>
    %cst_144 = arith.constant dense<0.000000e+00> : vector<8xf32>
    %260 = vector.multi_reduction <add>, %259, %cst_144 [1] : vector<8x128xf32> to vector<8xf32>
    %261 = vector.shape_cast %260 : vector<8xf32> to vector<8x1xf32>
    %cst_145 = arith.constant 1.280000e+02 : f32
    %262 = vector.broadcast %cst_145 : f32 to vector<8x1xf32>
    %263 = arith.divf %261, %262 : vector<8x1xf32>
    %264 = vector.broadcast %256 : vector<8x1xf32> to vector<8x128xf32>
    %265 = arith.subf %248, %264 : vector<8x128xf32>
    %cst_146 = arith.constant 9.99999974E-6 : f32
    %266 = vector.broadcast %cst_146 : f32 to vector<8x1xf32>
    %267 = arith.addf %263, %266 : vector<8x1xf32>
    %268 = math.rsqrt %267 : vector<8x1xf32>
    %269 = vector.broadcast %268 : vector<8x1xf32> to vector<8x128xf32>
    %270 = arith.mulf %265, %269 : vector<8x128xf32>
    %271 = vector.broadcast %250 : vector<1x128xf32> to vector<8x128xf32>
    %272 = arith.mulf %270, %271 : vector<8x128xf32>
    %273 = vector.broadcast %252 : vector<1x128xf32> to vector<8x128xf32>
    %274 = arith.addf %272, %273 : vector<8x128xf32>
    %cst_147 = arith.constant 0.000000e+00 : f32
    %275 = vector.broadcast %cst_147 : f32 to vector<8x128xf32>
    %276 = arith.maximumf %274, %275 : vector<8x128xf32>
    %277 = arith.truncf %276 : vector<8x128xf32> to vector<8x128xbf16>
    %c1_148 = arith.constant 1 : index
    %c0_149 = arith.constant 0 : index
    %c0_150 = arith.constant 0 : index
    %278 = vector.load %arg15[%c1_148, %c0_149, %c0_150] : memref<2x128x32xbf16, #tpu.memory_space<vmem>>, vector<1x128x32xbf16>
    %279 = vector.shape_cast %278 : vector<1x128x32xbf16> to vector<128x32xbf16>
    %cst_151 = arith.constant dense<0.000000e+00> : vector<8x32xf32>
    %280 = tpu.matmul %277, %279, %cst_151 {dimension_numbers = #tpu.dot_dimension_numbers<[1], [0], [0], [1], [0, 0, 1, 1], [], []>} : vector<8x128xbf16>, vector<128x32xbf16>, vector<8x32xf32> -> vector<8x32xf32>
    %c1_152 = arith.constant 1 : index
    %c0_153 = arith.constant 0 : index
    %c0_154 = arith.constant 0 : index
    %281 = vector.load %arg16[%c1_152, %c0_153, %c0_154] : memref<2x1x32xf32, #tpu.memory_space<vmem>>, vector<1x1x32xf32>
    %282 = vector.shape_cast %281 : vector<1x1x32xf32> to vector<1x32xf32>
    %283 = vector.broadcast %282 : vector<1x32xf32> to vector<8x32xf32>
    %284 = arith.addf %280, %283 : vector<8x32xf32>
    %285 = arith.addf %214, %284 : vector<8x32xf32>
    %c0_155 = arith.constant 0 : index
    %c0_156 = arith.constant 0 : index
    %286 = vector.load %arg17[%c0_155, %c0_156] : memref<1x32xf32, #tpu.memory_space<vmem>>, vector<1x32xf32>
    %c0_157 = arith.constant 0 : index
    %c0_158 = arith.constant 0 : index
    %287 = vector.load %arg18[%c0_157, %c0_158] : memref<1x32xf32, #tpu.memory_space<vmem>>, vector<1x32xf32>
    %cst_159 = arith.constant dense<0.000000e+00> : vector<8xf32>
    %288 = vector.multi_reduction <add>, %285, %cst_159 [1] : vector<8x32xf32> to vector<8xf32>
    %289 = vector.shape_cast %288 : vector<8xf32> to vector<8x1xf32>
    %cst_160 = arith.constant 3.200000e+01 : f32
    %290 = vector.broadcast %cst_160 : f32 to vector<8x1xf32>
    %291 = arith.divf %289, %290 : vector<8x1xf32>
    %292 = vector.broadcast %291 : vector<8x1xf32> to vector<8x32xf32>
    %293 = arith.subf %285, %292 : vector<8x32xf32>
    %294 = arith.mulf %293, %293 : vector<8x32xf32>
    %cst_161 = arith.constant dense<0.000000e+00> : vector<8xf32>
    %295 = vector.multi_reduction <add>, %294, %cst_161 [1] : vector<8x32xf32> to vector<8xf32>
    %296 = vector.shape_cast %295 : vector<8xf32> to vector<8x1xf32>
    %cst_162 = arith.constant 3.200000e+01 : f32
    %297 = vector.broadcast %cst_162 : f32 to vector<8x1xf32>
    %298 = arith.divf %296, %297 : vector<8x1xf32>
    %299 = vector.broadcast %291 : vector<8x1xf32> to vector<8x32xf32>
    %300 = arith.subf %285, %299 : vector<8x32xf32>
    %cst_163 = arith.constant 9.99999974E-6 : f32
    %301 = vector.broadcast %cst_163 : f32 to vector<8x1xf32>
    %302 = arith.addf %298, %301 : vector<8x1xf32>
    %303 = math.rsqrt %302 : vector<8x1xf32>
    %304 = vector.broadcast %303 : vector<8x1xf32> to vector<8x32xf32>
    %305 = arith.mulf %300, %304 : vector<8x32xf32>
    %306 = vector.broadcast %286 : vector<1x32xf32> to vector<8x32xf32>
    %307 = arith.mulf %305, %306 : vector<8x32xf32>
    %308 = vector.broadcast %287 : vector<1x32xf32> to vector<8x32xf32>
    %309 = arith.addf %307, %308 : vector<8x32xf32>
    %310 = arith.truncf %309 : vector<8x32xf32> to vector<8x32xbf16>
    %c0_164 = arith.constant 0 : index
    %c0_165 = arith.constant 0 : index
    %311 = vector.load %arg19[%c0_164, %c0_165] : memref<32x128xbf16, #tpu.memory_space<vmem>>, vector<32x128xbf16>
    %cst_166 = arith.constant dense<0.000000e+00> : vector<8x128xf32>
    %312 = tpu.matmul %310, %311, %cst_166 {dimension_numbers = #tpu.dot_dimension_numbers<[1], [0], [0], [1], [0, 0, 1, 1], [], []>} : vector<8x32xbf16>, vector<32x128xbf16>, vector<8x128xf32> -> vector<8x128xf32>
    %c0_167 = arith.constant 0 : index
    %c0_168 = arith.constant 0 : index
    %313 = vector.load %arg20[%c0_167, %c0_168] : memref<1x128xf32, #tpu.memory_space<vmem>>, vector<1x128xf32>
    %314 = vector.broadcast %313 : vector<1x128xf32> to vector<8x128xf32>
    %315 = arith.addf %312, %314 : vector<8x128xf32>
    %c0_169 = arith.constant 0 : index
    %c0_170 = arith.constant 0 : index
    %316 = vector.load %arg21[%c0_169, %c0_170] : memref<8x128xf32, #tpu.memory_space<vmem>>, vector<8x128xf32>
    tpu.vector_store %arg21[%c0_169, %c0_170], %315 {strides = array<i32>} : memref<8x128xf32, #tpu.memory_space<vmem>>, vector<8x128xf32>,
    return
  }
  func.func @transform_0(%arg0: i32) -> (i32, i32) {
    %c0_i32 = arith.constant 0 : i32
    %c0_i32_0 = arith.constant 0 : i32
    return %arg0, %c0_i32 : i32, i32
  }
  func.func @transform_1(%arg0: i32) -> (i32, i32, i32) {
    %c0_i32 = arith.constant 0 : i32
    %c0_i32_0 = arith.constant 0 : i32
    %c0_i32_1 = arith.constant 0 : i32
    %c0_i32_2 = arith.constant 0 : i32
    return %c0_i32, %c0_i32_0, %c0_i32_1 : i32, i32, i32
  }
  func.func @transform_2(%arg0: i32) -> (i32, i32, i32) {
    %c0_i32 = arith.constant 0 : i32
    %c0_i32_0 = arith.constant 0 : i32
    %c0_i32_1 = arith.constant 0 : i32
    %c0_i32_2 = arith.constant 0 : i32
    return %c0_i32, %c0_i32_0, %c0_i32_1 : i32, i32, i32
  }
  func.func @transform_3(%arg0: i32) -> (i32, i32, i32, i32) {
    %c0_i32 = arith.constant 0 : i32
    %c0_i32_0 = arith.constant 0 : i32
    %c0_i32_1 = arith.constant 0 : i32
    %c0_i32_2 = arith.constant 0 : i32
    %c0_i32_3 = arith.constant 0 : i32
    return %c0_i32, %c0_i32_0, %c0_i32_1, %c0_i32_2 : i32, i32, i32, i32
  }
  func.func @transform_4(%arg0: i32) -> (i32, i32, i32, i32) {
    %c0_i32 = arith.constant 0 : i32
    %c0_i32_0 = arith.constant 0 : i32
    %c0_i32_1 = arith.constant 0 : i32
    %c0_i32_2 = arith.constant 0 : i32
    %c0_i32_3 = arith.constant 0 : i32
    return %c0_i32, %c0_i32_0, %c0_i32_1, %c0_i32_2 : i32, i32, i32, i32
  }
  func.func @transform_5(%arg0: i32) -> (i32, i32, i32, i32) {
    %c0_i32 = arith.constant 0 : i32
    %c0_i32_0 = arith.constant 0 : i32
    %c0_i32_1 = arith.constant 0 : i32
    %c0_i32_2 = arith.constant 0 : i32
    %c0_i32_3 = arith.constant 0 : i32
    return %c0_i32, %c0_i32_0, %c0_i32_1, %c0_i32_2 : i32, i32, i32, i32
  }
  func.func @transform_6(%arg0: i32) -> (i32, i32, i32, i32) {
    %c0_i32 = arith.constant 0 : i32
    %c0_i32_0 = arith.constant 0 : i32
    %c0_i32_1 = arith.constant 0 : i32
    %c0_i32_2 = arith.constant 0 : i32
    %c0_i32_3 = arith.constant 0 : i32
    return %c0_i32, %c0_i32_0, %c0_i32_1, %c0_i32_2 : i32, i32, i32, i32
  }
  func.func @transform_7(%arg0: i32) -> (i32, i32, i32) {
    %c0_i32 = arith.constant 0 : i32
    %c0_i32_0 = arith.constant 0 : i32
    %c0_i32_1 = arith.constant 0 : i32
    %c0_i32_2 = arith.constant 0 : i32
    return %c0_i32, %c0_i32_0, %c0_i32_1 : i32, i32, i32
  }
  func.func @transform_8(%arg0: i32) -> (i32, i32, i32) {
    %c0_i32 = arith.constant 0 : i32
    %c0_i32_0 = arith.constant 0 : i32
    %c0_i32_1 = arith.constant 0 : i32
    %c0_i32_2 = arith.constant 0 : i32
    return %c0_i32, %c0_i32_0, %c0_i32_1 : i32, i32, i32
  }
  func.func @transform_9(%arg0: i32) -> (i32, i32, i32) {
    %c0_i32 = arith.constant 0 : i32
    %c0_i32_0 = arith.constant 0 : i32
    %c0_i32_1 = arith.constant 0 : i32
    %c0_i32_2 = arith.constant 0 : i32
    return %c0_i32, %c0_i32_0, %c0_i32_1 : i32, i32, i32
  }
  func.func @transform_10(%arg0: i32) -> (i32, i32, i32) {
    %c0_i32 = arith.constant 0 : i32
    %c0_i32_0 = arith.constant 0 : i32
    %c0_i32_1 = arith.constant 0 : i32
    %c0_i32_2 = arith.constant 0 : i32
    return %c0_i32, %c0_i32_0, %c0_i32_1 : i32, i32, i32
  }
  func.func @transform_11(%arg0: i32) -> (i32, i32, i32) {
    %c0_i32 = arith.constant 0 : i32
    %c0_i32_0 = arith.constant 0 : i32
    %c0_i32_1 = arith.constant 0 : i32
    %c0_i32_2 = arith.constant 0 : i32
    return %c0_i32, %c0_i32_0, %c0_i32_1 : i32, i32, i32
  }
  func.func @transform_12(%arg0: i32) -> (i32, i32, i32) {
    %c0_i32 = arith.constant 0 : i32
    %c0_i32_0 = arith.constant 0 : i32
    %c0_i32_1 = arith.constant 0 : i32
    %c0_i32_2 = arith.constant 0 : i32
    return %c0_i32, %c0_i32_0, %c0_i32_1 : i32, i32, i32
  }
  func.func @transform_13(%arg0: i32) -> (i32, i32, i32) {
    %c0_i32 = arith.constant 0 : i32
    %c0_i32_0 = arith.constant 0 : i32
    %c0_i32_1 = arith.constant 0 : i32
    %c0_i32_2 = arith.constant 0 : i32
    return %c0_i32, %c0_i32_0, %c0_i32_1 : i32, i32, i32
  }
  func.func @transform_14(%arg0: i32) -> (i32, i32, i32) {
    %c0_i32 = arith.constant 0 : i32
    %c0_i32_0 = arith.constant 0 : i32
    %c0_i32_1 = arith.constant 0 : i32
    %c0_i32_2 = arith.constant 0 : i32
    return %c0_i32, %c0_i32_0, %c0_i32_1 : i32, i32, i32
  }
  func.func @transform_15(%arg0: i32) -> (i32, i32, i32) {
    %c0_i32 = arith.constant 0 : i32
    %c0_i32_0 = arith.constant 0 : i32
    %c0_i32_1 = arith.constant 0 : i32
    %c0_i32_2 = arith.constant 0 : i32
    return %c0_i32, %c0_i32_0, %c0_i32_1 : i32, i32, i32
  }
  func.func @transform_16(%arg0: i32) -> (i32, i32) {
    %c0_i32 = arith.constant 0 : i32
    %c0_i32_0 = arith.constant 0 : i32
    %c0_i32_1 = arith.constant 0 : i32
    return %c0_i32, %c0_i32_0 : i32, i32
  }
  func.func @transform_17(%arg0: i32) -> (i32, i32) {
    %c0_i32 = arith.constant 0 : i32
    %c0_i32_0 = arith.constant 0 : i32
    %c0_i32_1 = arith.constant 0 : i32
    return %c0_i32, %c0_i32_0 : i32, i32
  }
  func.func @transform_18(%arg0: i32) -> (i32, i32) {
    %c0_i32 = arith.constant 0 : i32
    %c0_i32_0 = arith.constant 0 : i32
    %c0_i32_1 = arith.constant 0 : i32
    return %c0_i32, %c0_i32_0 : i32, i32
  }
  func.func @transform_19(%arg0: i32) -> (i32, i32) {
    %c0_i32 = arith.constant 0 : i32
    %c0_i32_0 = arith.constant 0 : i32
    %c0_i32_1 = arith.constant 0 : i32
    return %c0_i32, %c0_i32_0 : i32, i32
  }
  func.func @transform_20(%arg0: i32) -> (i32, i32) {
    %c0_i32 = arith.constant 0 : i32
    %c0_i32_0 = arith.constant 0 : i32
    return %arg0, %c0_i32 : i32, i32
  }
}

</mosaic_0001>

<bundles_post_ra>
// kernel: tpu_custom_call.1
= control target key start
LH: loop header
LB: loop body
LE: loop exit
PB: predicated region body
PF: predicated region fallthrough
CT: control target
= control target key end

     0   :  { %s5895_s0 = inlined_call_operand.vmem [shape: f32[16,32], index: 0, kind: input, shape index: {}]   ;;  %s5896_s1 = inlined_call_operand.vmem [shape: f32[2,1,32], index: 1, kind: input, shape index: {}]   ;;  %s5897_s2 = inlined_call_operand.vmem [shape: f32[2,1,32], index: 2, kind: input, shape index: {}]   ;;  %s5898_s3 = inlined_call_operand.vmem [shape: bf16[2,4,32,8], index: 3, kind: input, shape index: {}]   ;;  %s5899_s4 = inlined_call_operand.vmem [shape: bf16[2,4,32,8], index: 4, kind: input, shape index: {}]   ;;  %s5900_s5 = inlined_call_operand.vmem [shape: bf16[2,4,32,8], index: 5, kind: input, shape index: {}]   ;;  %s5901_s6 = inlined_call_operand.vmem [shape: bf16[2,4,8,32], index: 6, kind: input, shape index: {}]   ;;  %s5902_s7 = inlined_call_operand.vmem [shape: f32[2,1,32], index: 7, kind: input, shape index: {}]   ;;  %s5903_s8 = inlined_call_operand.vmem [shape: f32[2,1,32], index: 8, kind: input, shape index: {}]   ;;  %s5904_s9 = inlined_call_operand.vmem [shape: f32[2,1,32], index: 9, kind: input, shape index: {}]   ;;  %s5905_s10 = inlined_call_operand.vmem [shape: bf16[2,32,128], index: 10, kind: input, shape index: {}]   ;;  %s5906_s11 = inlined_call_operand.vmem [shape: f32[2,1,128], index: 11, kind: input, shape index: {}]   ;;  %s5907_s12 = inlined_call_operand.vmem [shape: f32[2,1,128], index: 12, kind: input, shape index: {}]   ;;  %s5908_s13 = inlined_call_operand.vmem [shape: f32[2,1,128], index: 13, kind: input, shape index: {}]   ;;  %s5909_s14 = inlined_call_operand.vmem [shape: bf16[2,128,32], index: 14, kind: input, shape index: {}]   ;;  %s5910_s15 = inlined_call_operand.vmem [shape: f32[2,1,32], index: 15, kind: input, shape index: {}]   ;;  %s5911_s16 = inlined_call_operand.vmem [shape: f32[1,32], index: 16, kind: input, shape index: {}]   ;;  %s5912_s17 = inlined_call_operand.vmem [shape: f32[1,32], index: 17, kind: input, shape index: {}]   ;;  %s5913_s18 = inlined_call_operand.vmem [shape: bf16[32,128], index: 18, kind: input, shape index: {}]   ;;  %s5914_s19 = inlined_call_operand.vmem [shape: f32[1,128], index: 19, kind: input, shape index: {}]   ;;  %s5915_s20 = inlined_call_operand.hbm [shape: f32[16,128], index: 20, kind: output, shape index: {}]  }
   0x1   :  { %5928 = sst [smem:[#allocation11_spill]] %s5895_s0 }
   0x2   :  { %5929 = sst [smem:[#allocation12_spill]] %s5896_s1 }
   0x3   :  { %5930 = sst [smem:[#allocation13_spill]] %s5897_s2 }
   0x4   :  { %5931 = sst [smem:[#allocation14_spill]] %s5898_s3 }
   0x5   :  { %5932 = sst [smem:[#allocation15_spill]] %s5899_s4 }
   0x6   :  { %5933 = sst [smem:[#allocation16_spill]] %s5900_s5 }
   0x7   :  { %5934 = sst [smem:[#allocation17_spill]] %s5915_s20 }
   0x8   :  { %25 = vsyncpa [#allocation3], 0 }
   0x9   :  { %27 = vsyncpa [#allocation3 + $0x1], 0  ;;  %s5105_s1 = smov 0   ;;  %s5107_s22 = smov 0  }
   0xa   :  { %s5109_s23 = smov 0   ;;  %s5111_s24 = smov 0  }
   0xb LB: > { %5935 = sst [smem:[#allocation5_spill]] %s4983_s1  ;;  %s5126_s2 = sadd.s32 4294967295, %s4995_s24   ;;  %s4995_s24 = sphi %s5111_s24, %s5957_s24   ;;  %s4991_s23 = sphi %s5109_s23, %s5959_s23   ;;  %s4987_s22 = sphi %s5107_s22, %s5961_s22   ;;  %s4983_s1 = sphi %s5105_s1, %s5960_s1  }
   0xc   : > { %5936 = sst [smem:[#allocation6_spill]] %s4991_s23  ;;  %s3996_s25 = sadd.s32 4294967294, %s4995_s24  }
   0xd   : > { %5937 = sst [smem:[#allocation7_spill]] %s4995_s24  ;;  %s5130_s3 = sadd.s32 1, %s4995_s24  }
   0xe   : > { %5938 = sst [smem:[#allocation8_spill]] %s5130_s3  ;;  %s465_s26 = sadd.s32 1, %s4991_s23 }
   0xf   : > { %s462_s27 = ssub.s32 %s4995_s24, %s5130_s3  ;;  %p475_p0 = scmp.ne.s32.totalorder %s4991_s23, %s4987_s22 }
  0x10   : > { %p463_p1 = scmp.eq.s32.totalorder %s462_s27, 0  ;;  %p476_p2 = scmp.eq.s32.totalorder %s5126_s2, 1 }
  0x11   : > { %p481_p3 = scmp.ne.s32.totalorder %s4987_s22, %s4983_s1  ;;  %p482_p4 = scmp.eq.s32.totalorder %s3996_s25, 1 }
  0x12   : > { %s5141_s28 = scalar_select %p463_p1, %s4991_s23, %s465_s26  }
  0x13   : > { %p5143_p5 = por %p476_p2, %p475_p0  ;;  %p5147_p6 = por %p482_p4, %p481_p3 }
  0x14   : > { %5939 = sst [smem:[#allocation9_spill]] %s5141_s28  ;;  %p3999_p7 = scmp.ge.s32.totalorder %s4995_s24, 1 }
  0x15   : > { %s5941_s29 = scalar_select %p5147_p6, 1, 0 }
  0x16   : > { %p564_p8 = scmp.lt.s32.totalorder %s4995_s24, 3 }
  0x17   : > { %5942 = sst [smem:[#allocation10_spill]] %s5941_s29 }
  0x18   : > { %p565_p9 = pnand %p3999_p7, %p564_p8 }
  0x19   : > { %p621_p10 = scmp.lt.s32.totalorder (!%p565_p9), %s5126_s2, 1  ;;  %vm636_vm0 = vcmask (!%p565_p9), 261120   ;;  %s5943_s26 = sld [smem:[#allocation11_spill]] (!%p565_p9)  ;;  %v4997_v9 = vmov (!%p565_p9), 0.0   ;;  %vm4998_vm1 = vmmov (!%p565_p9), 0   ;;  %vm1353_vm2 = vcmask (!%p565_p9), 64512  }
  0x1a   : > { %568 = sbr.rel (%p565_p9) target bundleno = 5775 (0x168f), region = 100  ;;  %s5944_s23 = sld [smem:[#allocation14_spill]] (!%p565_p9)  ;;  %4376 = vmatprep.subr.bf16.mxu1 (!%p565_p9), %v4997_v9  ;;  %4392 = vmatprep.subr.bf16.mxu0 (!%p565_p9), %v4997_v9  ;;  %vm1601_vm3 = vcmask (!%p565_p9), 1043456  }
  0x1b   : > { %4380 = vmatprep.mubr.msk.bf16.mxu1 (!%p565_p9), %vm4998_vm1, %v4997_v9  ;;  %4396 = vmatprep.mubr.msk.bf16.mxu0 (!%p565_p9), %vm4998_vm1, %v4997_v9  ;;  %s5946_s21 = sld [smem:[#allocation12_spill]] (!%p565_p9)  ;;  %s5948_s24 = sld [smem:[#allocation15_spill]] (!%p565_p9) }
  0x1c   : > { %s5950_s5 = sld [smem:[#allocation16_spill]] (!%p565_p9)  ;;  %s4226_s1 = sshll.u32 (!%p565_p9), %s5126_s2, 7 }
  0x20   : > { %s5945_s3 = smov (!%p565_p9), %s5944_s23  ;;  %v4817_v7 = vld [vmem:[%s5944_s23] sm:$0xff] (!%p565_p9)  }
  0x21   : > { %s622_s30 = scalar_select %p621_p10, %s5126_s2, 1  ;;  %v4818_v8 = vld [vmem:[%s5945_s3 + $0x20] sm:$0xff]   ;;  %4377 = vmatpush3.bf16.msra.mxu1 %v4817_v7  ;;  %v4819_v10 = vld [vmem:[%s5945_s3 + $0x8] sm:$0xff]   ;;  %v4821_v21 = vld [vmem:[%s5945_s3 + $0x10] sm:$0xff]  }
  0x22   : > { %4393 = vmatpush3.bf16.msra.mxu0 %v4818_v8  ;;  %4378 = vmatprep.subr.bf16.mxu1 %v4997_v9  ;;  %v4820_v11 = vld [vmem:[%s5945_s3 + $0x28] sm:$0xff]   ;;  %v4002_v16 = vld [vmem:[%s5946_s21] ss:$0 sm:$0xff]  ;;  %s5949_s20 = smov %s5948_s24  ;;  %v4823_v24 = vld [vmem:[%s5945_s3 + $0x18] sm:$0xff]  }
  0x23   : > { %s4001_s0 = sshll.u32 %s622_s30, 3  ;;  %4394 = vmatprep.subr.bf16.mxu0 %v4997_v9  ;;  %v4822_v22 = vld [vmem:[%s5948_s24] sm:$0xff]   ;;  %v4824_v25 = vld [vmem:[%s5949_s20 + $0x8] sm:$0xff]   ;;  %v4825_v26 = vld [vmem:[%s5945_s3 + $0x30] sm:$0xff]  }
  0x24   : > { %s624_s27 = scalar_lea.vmem %s5943_s26, %s4001_s0  ;;  %s5947_s26 = sld [smem:[#allocation13_spill]]  ;;  %v4826_v27 = vld [vmem:[%s5949_s20 + $0x20] sm:$0xff]   ;;  %v4827_v28 = vld [vmem:[%s5945_s3 + $0x38] sm:$0xff]   ;;  %v4828_v29 = vld [vmem:[%s5949_s20 + $0x28] sm:$0xff]  }
  0x25   : > { %v5158_v0 = vld [vmem:[%s624_s27] sm:$0xff]  ;;  %4379 = vmatpush3.bf16.msra.mxu1 %v4819_v10  ;;  %v4829_v30 = vld [vmem:[%s5949_s20 + $0x10] sm:$0xff]   ;;  %v4831_v32 = vld [vmem:[%s5949_s20 + $0x18] sm:$0xff]   ;;  %s618_s27 = sand.u32 1, %s4987_s22  }
  0x26   : > { %v637_v1 = vsel %vm636_vm0, %v5158_v0, 0.0  ;;  %4395 = vmatpush3.bf16.msra.mxu0 %v4820_v11  ;;  %4384 = vmatprep.subr.bf16.mxu1 %v4997_v9  ;;  %v4830_v31 = vld [vmem:[%s5950_s5] sm:$0xff]   ;;  %v4832_v33 = vld [vmem:[%s5950_s5 + $0x8] sm:$0xff]   ;;  %v4833_v34 = vld [vmem:[%s5949_s20 + $0x30] sm:$0xff]   ;;  %s4000_s30 = sshll.u32 %s618_s27, 3  ;;  %s3924_s0 = scalar_lea.sflag [#allocation3], %s618_s27 }
  0x27   : > { %638 = vadd.xlane.f32.xlu0 %v637_v1  ;;  %4408 = vmatprep.subr.bf16.mxu0 %v4997_v9  ;;  %v4834_v35 = vld [vmem:[%s5950_s5 + $0x20] sm:$0xff]   ;;  %v4835_v36 = vld [vmem:[%s5949_s20 + $0x38] sm:$0xff]   ;;  %v4836_v37 = vld [vmem:[%s5950_s5 + $0x28] sm:$0xff]   ;;  %s620_s24 = scalar_lea.vmem [#allocation2], %s4000_s30  ;;  %s4999_s30 = smov [#allocation2]  }
  0x28   : > { %v4837_v38 = vld [vmem:[%s5950_s5 + $0x10] sm:$0xff]   ;;  %v4838_v39 = vld [vmem:[%s5950_s5 + $0x18] sm:$0xff]   ;;  %s3937_s29 = sshll.u32 %s620_s24, 4  ;;  %s4937_s25 = sshll.u32 %s4999_s30, 4  ;;  %s5855_s29 = int_to_ptr.vmem [resolvable:$true] %s3937_s29  ;;  %s4938_s25 = int_to_ptr.vmem [resolvable:$false] %s4937_s25 }
  0x29   : > { %v4839_v40 = vld [vmem:[%s5950_s5 + $0x30] sm:$0xff]   ;;  %v4840_v41 = vld [vmem:[%s5950_s5 + $0x38] sm:$0xff]   ;;  %s4933_s2 = scalar_lea.vmem %s5855_s29, 128  ;;  %s4939_s23 = scalar_lea.vmem %s4938_s25, 256 }
  0x2a   : > { %v4003_v18 = vld [vmem:[%s5947_s26] ss:$0 sm:$0xff]  ;;  %p4934_p11 = scmp.ne.s32.totalorder %s5855_s29, %s4933_s2  ;;  %p4940_p0 = scmp.lt.s32.totalorder %s5855_s29, %s4938_s25 }
  0x2b   : > { %p4941_p1 = scmp.lt.s32.totalorder %s4939_s23, %s4933_s2 }
  0x2c   : > { %p4935_p12 = pnand %p4934_p11, %p5143_p5 }
  0x2d   : > { %p4942_p2 = por %p4941_p1, %p4940_p0 }
  0x2e   : > { %p4936_p13 = pneg %p4935_p12 }
  0x30   : > { %p4943_p3 = pnand %p4942_p2, %p4936_p13 }
  0xb4   : > { %v639_v2 = vpop.xlane.xlu0 %638 }
  0xb5   : > { %v641_v3 = vmul.f32 0.03125, %v639_v2 }
  0xb7   : > { %v642_v4 = vsub.f32 %v5158_v0, %v641_v3 }
  0xb9   : > { %v643_v5 = vmul.f32 %v642_v4, %v642_v4 }
  0xbb   : > { %v644_v6 = vsel %vm636_vm0, %v643_v5, 0.0 }
  0xbc   : > { %645 = vadd.xlane.f32.xlu0 %v644_v6 }
 0x149   : > { %v646_v12 = vpop.xlane.xlu0 %645 }
 0x14a   : > { %v647_v13 = vmul.f32 0.03125, %v646_v12 }
 0x14c   : > { %v648_v14 = vadd.f32 1e-05, %v647_v13 }
 0x14e   : > { %4887 = vrsqrt.f32 %v648_v14 }
 0x158   : > { %v4888_v15 = vpop.eup %4887 }
 0x159   : > { %v650_v17 = vmul.f32 %v4888_v15, %v642_v4 }
 0x15b   : > { %v657_v19 = vmul.f32 %v4002_v16, %v650_v17 }
 0x15d   : > { %v664_v20 = vadd.f32 %v4003_v18, %v657_v19 }
 0x15f   : > { %v5198_v23 = vpack.c.bf16 %v664_v20, %v664_v20 }
 0x161   : > { %4381 = vmatmul.mubr.msk.bf16.vlgmr.msra.gmra.mrb[0].mxu1 %vm636_vm0, %v5198_v23  ;;  %4397 = vmatmul.mubr.msk.bf16.vlgmr.msra.gmra.mrb[0].mxu0 %vm636_vm0, %v5198_v23 }
 0x162   : > { %4385 = vmatpush3.bf16.msra.mxu1 %v4821_v21  ;;  %4409 = vmatpush3.bf16.msra.mxu0 %v4822_v22 }
 0x163   : > { %4386 = vmatprep.subr.bf16.mxu1 %v4997_v9  ;;  %4410 = vmatprep.subr.bf16.mxu0 %v4997_v9 }
 0x164   : > { %4388 = vmatprep.mubr.msk.bf16.mxu1 %vm4998_vm1, %v4997_v9  ;;  %4412 = vmatprep.mubr.msk.bf16.mxu0 %vm4998_vm1, %v4997_v9 }
 0x166   : > { %4387 = vmatpush3.bf16.msra.mxu1 %v4823_v24  ;;  %4411 = vmatpush3.bf16.msra.mxu0 %v4824_v25 }
 0x167   : > { %4400 = vmatprep.subr.bf16.mxu1 %v4997_v9  ;;  %4424 = vmatprep.subr.bf16.mxu0 %v4997_v9 }
 0x169   : > { %4389 = vmatmul.mubr.msk.bf16.vlgmr.msra.gmra.mrb[4].mxu1 %vm636_vm0, %v5198_v23  ;;  %4413 = vmatmul.mubr.msk.bf16.vlgmr.msra.gmra.mrb[4].mxu0 %vm636_vm0, %v5198_v23 }
 0x16a   : > { %4401 = vmatpush3.bf16.msra.mxu1 %v4825_v26  ;;  %4425 = vmatpush3.bf16.msra.mxu0 %v4826_v27 }
 0x16b   : > { %4402 = vmatprep.subr.bf16.mxu1 %v4997_v9  ;;  %4426 = vmatprep.subr.bf16.mxu0 %v4997_v9 }
 0x16c   : > { %4404 = vmatprep.mubr.msk.bf16.mxu1 %vm4998_vm1, %v4997_v9  ;;  %4428 = vmatprep.mubr.msk.bf16.mxu0 %vm4998_vm1, %v4997_v9 }
 0x16e   : > { %4403 = vmatpush3.bf16.msra.mxu1 %v4827_v28  ;;  %4427 = vmatpush3.bf16.msra.mxu0 %v4828_v29 }
 0x16f   : > { %4416 = vmatprep.subr.bf16.mxu1 %v4997_v9  ;;  %4440 = vmatprep.subr.bf16.mxu0 %v4997_v9 }
 0x171   : > { %4405 = vmatmul.mubr.msk.bf16.vlgmr.msra.gmra.mrb[8].mxu1 %vm636_vm0, %v5198_v23  ;;  %4429 = vmatmul.mubr.msk.bf16.vlgmr.msra.gmra.mrb[8].mxu0 %vm636_vm0, %v5198_v23 }
 0x172   : > { %4417 = vmatpush3.bf16.msra.mxu1 %v4829_v30  ;;  %4441 = vmatpush3.bf16.msra.mxu0 %v4830_v31 }
 0x173   : > { %4418 = vmatprep.subr.bf16.mxu1 %v4997_v9  ;;  %4442 = vmatprep.subr.bf16.mxu0 %v4997_v9 }
 0x174   : > { %4420 = vmatprep.mubr.msk.bf16.mxu1 %vm4998_vm1, %v4997_v9  ;;  %4444 = vmatprep.mubr.msk.bf16.mxu0 %vm4998_vm1, %v4997_v9 }
 0x176   : > { %4419 = vmatpush3.bf16.msra.mxu1 %v4831_v32  ;;  %4443 = vmatpush3.bf16.msra.mxu0 %v4832_v33 }
 0x177   : > { %4432 = vmatprep.subr.bf16.mxu1 %v4997_v9  ;;  %4456 = vmatprep.subr.bf16.mxu0 %v4997_v9 }
 0x179   : > { %4421 = vmatmul.mubr.msk.bf16.vlgmr.msra.gmra.mrb[12].mxu1 %vm636_vm0, %v5198_v23  ;;  %4445 = vmatmul.mubr.msk.bf16.vlgmr.msra.gmra.mrb[12].mxu0 %vm636_vm0, %v5198_v23 }
 0x17a   : > { %4433 = vmatpush3.bf16.msra.mxu1 %v4833_v34  ;;  %4457 = vmatpush3.bf16.msra.mxu0 %v4834_v35 }
 0x17b   : > { %4434 = vmatprep.subr.bf16.mxu1 %v4997_v9  ;;  %4458 = vmatprep.subr.bf16.mxu0 %v4997_v9 }
 0x17c   : > { %4436 = vmatprep.mubr.msk.bf16.mxu1 %vm4998_vm1, %v4997_v9  ;;  %4460 = vmatprep.mubr.msk.bf16.mxu0 %vm4998_vm1, %v4997_v9 }
 0x17e   : > { %4435 = vmatpush3.bf16.msra.mxu1 %v4835_v36  ;;  %4459 = vmatpush3.bf16.msra.mxu0 %v4836_v37 }
 0x17f   : > { %4448 = vmatprep.subr.bf16.mxu1 %v4997_v9  ;;  %4472 = vmatprep.subr.bf16.mxu0 %v4997_v9 }
 0x181   : > { %4437 = vmatmul.mubr.msk.bf16.vlgmr.msra.gmra.mrb[16].mxu1 %vm636_vm0, %v5198_v23  ;;  %4461 = vmatmul.mubr.msk.bf16.vlgmr.msra.gmra.mrb[16].mxu0 %vm636_vm0, %v5198_v23 }
 0x182   : > { %4449 = vmatpush3.bf16.msra.mxu1 %v4837_v38  ;;  %4452 = vmatprep.mubr.msk.bf16.mxu1 %vm4998_vm1, %v4997_v9 }
 0x183   : > { %4450 = vmatprep.subr.bf16.mxu1 %v4997_v9  ;;  %4474 = vmatprep.mubr.msk.bf16.mxu0 %vm4998_vm1, %v4997_v9 }
 0x186   : > { %4451 = vmatpush3.bf16.msra.mxu1 %v4838_v39 }
 0x187   : > { %4464 = vmatprep.subr.bf16.mxu1 %v4997_v9 }
 0x189   : > { %4453 = vmatmul.mubr.msk.bf16.vlgmr.msra.gmra.mrb[20].mxu1 %vm636_vm0, %v5198_v23 }
 0x18a   : > { %4465 = vmatpush3.bf16.msra.mxu1 %v4839_v40  ;;  %4468 = vmatprep.mubr.msk.bf16.mxu1 %vm4998_vm1, %v4997_v9 }
 0x18b   : > { %4466 = vmatprep.subr.bf16.mxu1 %v4997_v9 }
 0x18e   : > { %4467 = vmatpush3.bf16.msra.mxu1 %v4840_v41 }
 0x18f   : > { %4478 = vmatprep.subr.bf16.mxu1 %v4997_v9 }
 0x191   : > { %4469 = vmatmul.mubr.msk.bf16.vlgmr.msra.gmra.mrb[24].mxu1 %vm636_vm0, %v5198_v23 }
 0x192   : > { %4480 = vmatprep.mubr.msk.bf16.mxu1 %vm4998_vm1, %v4997_v9 }
 0x234   : > { %v767_v42 = vpop.f32.mrb[0].mxu1  ;;  %v871_v43 = vpop.f32.mrb[0].mxu0 }
 0x235   : > { %v4382_v44 = vpop.f32.mrb[1].mxu1  ;;  %v4398_v45 = vpop.f32.mrb[1].mxu0  ;;  %v1345_v62 = vpack.c.bf16 %v767_v42, %v767_v42  ;;  %v1347_v11 = vpack.c.bf16 %v871_v43, %v871_v43 }
 0x236   : > { %v770_v46 = vpop.f32.mrb[2].mxu1  ;;  %v874_v47 = vpop.f32.mrb[2].mxu0  ;;  %v627_v44 = vlaneseq }
 0x237   : > { %v4383_v48 = vpop.f32.mrb[3].mxu1  ;;  %v4399_v49 = vpop.f32.mrb[3].mxu0 }
 0x238   : > { %v628_v45 = vshrl.u32 %v627_v44, 7  ;;  %v630_v46 = vand.u32 127, %v627_v44 }
 0x23a   : > { %vm5350_vm4 = vcmp.le.s32.totalorder %v630_v46, %v628_v45 }
 0x23c   : > { %v819_v50 = vpop.f32.mrb[4].mxu1  ;;  %v975_v51 = vpop.f32.mrb[4].mxu0 }
 0x23d   : > { %v1349_v52 = vpack.c.bf16 %v975_v51, %v975_v51  ;;  %v4390_v53 = vpop.f32.mrb[5].mxu1  ;;  %v4414_v54 = vpop.f32.mrb[5].mxu0  ;;  %v1346_v24 = vpack.c.bf16 %v819_v50, %v819_v50 }
 0x23e   : > { %v822_v55 = vpop.f32.mrb[6].mxu1  ;;  %v978_v56 = vpop.f32.mrb[6].mxu0 }
 0x23f   : > { %v1358_v57 = vsel %vm1353_vm2, %v1349_v52, 0  ;;  %v4391_v58 = vpop.f32.mrb[7].mxu1  ;;  %v4415_v59 = vpop.f32.mrb[7].mxu0 }
 0x240   : > { %4473 = vmatpush3.bf16.xpose.msra.mxu0 %v1358_v57 }
 0x241   : > { %4484 = vmatprep.subr.bf16.mxu0 %v4997_v9 }
 0x244   : > { %v923_v60 = vpop.f32.mrb[8].mxu1  ;;  %v1079_v61 = vpop.f32.mrb[8].mxu0 }
 0x245   : > { %v1351_v63 = vpack.c.bf16 %v1079_v61, %v1079_v61  ;;  %v4406_v1 = vpop.f32.mrb[9].mxu1  ;;  %v4430_v2 = vpop.f32.mrb[9].mxu0  ;;  %v1348_v34 = vpack.c.bf16 %v923_v60, %v923_v60 }
 0x246   : > { %v926_v3 = vpop.f32.mrb[10].mxu1  ;;  %v1082_v4 = vpop.f32.mrb[10].mxu0 }
 0x247   : > { %v1450_v5 = vsel %vm1353_vm2, %v1351_v63, 0  ;;  %v4407_v6 = vpop.f32.mrb[11].mxu1  ;;  %v4431_v7 = vpop.f32.mrb[11].mxu0  ;;  %4475 = vmatmul.mubr.msk.bf16.vlgmr.msra.gmra.mrb[20].mxu0 %vm1353_vm2, %v1345_v62 }
 0x248   : > { %4485 = vmatpush3.bf16.xpose.msra.mxu0 %v1450_v5  ;;  %4486 = vmatprep.mubr.msk.bf16.mxu0 %vm4998_vm1, %v4997_v9 }
 0x249   : > { %4496 = vmatprep.subr.bf16.mxu0 %v4997_v9 }
 0x24c   : > { %v1027_v8 = vpop.f32.mrb[12].mxu1  ;;  %v1183_v10 = vpop.f32.mrb[12].mxu0 }
 0x24d   : > { %v1350_v12 = vpack.c.bf16 %v1027_v8, %v1027_v8  ;;  %v1594_v13 = vpack.c.bf16 %v1183_v10, %v1183_v10  ;;  %v4422_v14 = vpop.f32.mrb[13].mxu1  ;;  %v4446_v15 = vpop.f32.mrb[13].mxu0 }
 0x24e   : > { %v1030_v16 = vpop.f32.mrb[14].mxu1  ;;  %v1186_v17 = vpop.f32.mrb[14].mxu0 }
 0x24f   : > { %v1404_v18 = vsel %vm1353_vm2, %v1350_v12, 0  ;;  %v1603_v19 = vsel %vm1601_vm3, %v1594_v13, 0  ;;  %v4423_v20 = vpop.f32.mrb[15].mxu1  ;;  %v4447_v21 = vpop.f32.mrb[15].mxu0  ;;  %4487 = vmatmul.mubr.msk.bf16.vlgmr.msra.gmra.mrb[24].mxu0 %vm1353_vm2, %v1347_v11 }
 0x250   : > { %4479 = vmatpush3.bf16.xpose.msra.mxu1 %v1404_v18  ;;  %4497 = vmatpush3.bf16.msra.mxu0 %v1603_v19 }
 0x251   : > { %4490 = vmatprep.subr.bf16.mxu1 %v4997_v9  ;;  %4498 = vmatprep.mubr.msk.bf16.mxu0 %vm4998_vm1, %v4997_v9 }
 0x252   : > { %4508 = vmatprep.subr.bf16.mxu0 %v4997_v9 }
 0x254   : > { %v1131_v22 = vpop.f32.mrb[16].mxu1  ;;  %v5336_v23 = vpop.f32.mrb[16].mxu0 }
 0x255   : > { %v1352_v25 = vpack.c.bf16 %v1131_v22, %v1131_v22  ;;  %v4438_v26 = vpop.f32.mrb[17].mxu1  ;;  %v4462_v27 = vpop.f32.mrb[17].mxu0 }
 0x256   : > { %v1134_v28 = vpop.f32.mrb[18].mxu1  ;;  %v1290_v29 = vpop.f32.mrb[18].mxu0 }
 0x257   : > { %v1496_v30 = vsel %vm1353_vm2, %v1352_v25, 0  ;;  %v4439_v31 = vpop.f32.mrb[19].mxu1  ;;  %v4463_v32 = vpop.f32.mrb[19].mxu0  ;;  %4481 = vmatmul.mubr.msk.bf16.vlgmr.msra.gmra.mrb[28].mxu1 %vm1353_vm2, %v1346_v24 }
 0x258   : > { %4491 = vmatpush3.bf16.xpose.msra.mxu1 %v1496_v30  ;;  %4492 = vmatprep.mubr.msk.bf16.mxu1 %vm4998_vm1, %v4997_v9 }
 0x259   : > { %4502 = vmatprep.subr.bf16.mxu1 %v4997_v9 }
 0x25c   : > { %v1235_v33 = vpop.f32.mrb[20].mxu1 }
 0x25d   : > { %v1595_v35 = vpack.c.bf16 %v1235_v33, %v1235_v33  ;;  %v4454_v36 = vpop.f32.mrb[21].mxu1 }
 0x25e   : > { %v1238_v37 = vpop.f32.mrb[22].mxu1 }
 0x25f   : > { %v1649_v38 = vsel %vm1601_vm3, %v1595_v35, 0  ;;  %v4455_v39 = vpop.f32.mrb[23].mxu1  ;;  %4493 = vmatmul.mubr.msk.bf16.vlgmr.msra.gmra.mrb[32].mxu1 %vm1353_vm2, %v1348_v34 }
 0x260   : > { %4503 = vmatpush3.bf16.msra.mxu1 %v1649_v38  ;;  %4504 = vmatprep.mubr.msk.bf16.mxu1 %vm4998_vm1, %v4997_v9  ;;  %v1596_v38 = vpack.c.bf16 %v5336_v23, %v5336_v23 }
 0x261   : > { %4514 = vmatprep.subr.bf16.mxu1 %v4997_v9 }
 0x264   : > { %v5348_v40 = vpop.f32.mrb[24].mxu1 }
 0x265   : > { %v4470_v41 = vpop.f32.mrb[25].mxu1 }
 0x266   : > { %v1342_v42 = vpop.f32.mrb[26].mxu1 }
 0x267   : > { %v4471_v43 = vpop.f32.mrb[27].mxu1  ;;  %v1695_v42 = vsel %vm1601_vm3, %v1596_v38, 0 }
 0x31a   : > { %v1394_v47 = vpop.f32.mrb[20].mxu0 }
 0x31b   : > { %v1538_v49 = vmul.f32 0.17677669, %v1394_v47  ;;  %v4476_v50 = vpop.f32.mrb[21].mxu0 }
 0x31c   : > { %v1397_v51 = vpop.f32.mrb[22].mxu0 }
 0x31d   : > { %v4477_v52 = vpop.f32.mrb[23].mxu0  ;;  %v1542_v53 = vsel %vm5350_vm4, %v1538_v49, -inf  ;;  %v1597_v49 = vpack.c.bf16 %v5348_v40, %v5348_v40  ;;  %v713_v40 = vld [vmem:[%s5901_s6] sm:$0xf] }
 0x31e   : > { %v1546_v54 = vsel %vm1353_vm2, %v1542_v53, -inf }
 0x31f   : > { %1547 = vmax.xlane.f32.xlu1 %v1546_v54  ;;  %v1741_v52 = vsel %vm1601_vm3, %v1597_v49, 0 }
 0x322   : > { %v1486_v55 = vpop.f32.mrb[24].mxu0 }
 0x323   : > { %v1540_v56 = vmul.f32 0.17677669, %v1486_v55  ;;  %v4488_v57 = vpop.f32.mrb[25].mxu0 }
 0x324   : > { %v1489_v58 = vpop.f32.mrb[26].mxu0  ;;  %v714_v57 = vld [vmem:[%s5901_s6 + $0x4] sm:$0xf] }
 0x325   : > { %v4489_v59 = vpop.f32.mrb[27].mxu0  ;;  %v1544_v60 = vsel %vm5350_vm4, %v1540_v56, -inf  ;;  %v1791_v56 = vsel %vm1601_vm3, %v713_v40, 0  ;;  %v1837_v58 = vsel %vm1601_vm3, %v714_v57, 0 }
 0x326   : > { %v1552_v61 = vsel %vm1353_vm2, %v1544_v60, -inf  ;;  %v715_v59 = vld [vmem:[%s5901_s6 + $0x8] sm:$0xf] }
 0x327   : > { %1553 = vmax.xlane.f32.xlu0 %v1552_v61 }
 0x32a   : > { %v1440_v62 = vpop.f32.mrb[28].mxu1 }
 0x32b   : > { %v1539_v63 = vmul.f32 0.17677669, %v1440_v62  ;;  %v4482_v1 = vpop.f32.mrb[29].mxu1 }
 0x32c   : > { %v1443_v2 = vpop.f32.mrb[30].mxu1 }
 0x32d   : > { %v4483_v3 = vpop.f32.mrb[31].mxu1  ;;  %v1543_v4 = vsel %vm5350_vm4, %v1539_v63, -inf  ;;  %v1883_v63 = vsel %vm1601_vm3, %v715_v59, 0  ;;  %v4053_v59 = vld [vmem:[%s5903_s8] ss:$0 sm:$0xff] }
 0x32e   : > { %v1549_v5 = vsel %vm1353_vm2, %v1543_v4, -inf }
 0x32f   : > { %1550 = vmax.xlane.f32.xlu1 %v1549_v5 }
 0x332   : > { %v1532_v6 = vpop.f32.mrb[32].mxu1 }
 0x333   : > { %v1541_v7 = vmul.f32 0.17677669, %v1532_v6  ;;  %v4494_v8 = vpop.f32.mrb[33].mxu1 }
 0x334   : > { %v1535_v10 = vpop.f32.mrb[34].mxu1  ;;  %v716_v8 = vld [vmem:[%s5901_s6 + $0xc] sm:$0xf] }
 0x335   : > { %v4495_v11 = vpop.f32.mrb[35].mxu1  ;;  %v1545_v12 = vsel %vm5350_vm4, %v1541_v7, -inf }
 0x336   : > { %v1555_v13 = vsel %vm1353_vm2, %v1545_v12, -inf }
 0x337   : > { %1556 = vmax.xlane.f32.xlu1 %v1555_v13  ;;  %v1929_v13 = vsel %vm1601_vm3, %v716_v8, 0  ;;  %v4843_v8 = vld [vmem:[%s5909_s14] sm:$0xff]  }
 0x3ac   : > { %v1548_v14 = vpop.xlane.xlu1 %1547 }
 0x3ad   : > { %v1558_v15 = vsub.f32 %v1542_v53, %v1548_v14 }
 0x3af   : > { %v1562_v16 = vmul.f32 1.442695, %v1558_v15 }
 0x3b1   : > { %4889 = vpow2.f32 %v1562_v16 }
 0x3b4   : > { %v1554_v17 = vpop.xlane.xlu0 %1553 }
 0x3b5   : > { %v1560_v18 = vsub.f32 %v1544_v60, %v1554_v17 }
 0x3b7   : > { %v1566_v19 = vmul.f32 1.442695, %v1560_v18 }
 0x3b9   : > { %4891 = vpow2.f32 %v1566_v19 }
 0x3bb   : > { %v4890_v20 = vpop.eup %4889 }
 0x3bc   : > { %v1551_v21 = vpop.xlane.xlu1 %1550  ;;  %v1570_v22 = vsel %vm1353_vm2, %v4890_v20, 0.0 }
 0x3bd   : > { %v1559_v24 = vsub.f32 %v1543_v4, %v1551_v21  ;;  %1571 = vadd.xlane.f32.xlu0 %v1570_v22 }
 0x3bf   : > { %v1564_v25 = vmul.f32 1.442695, %v1559_v24 }
 0x3c1   : > { %4893 = vpow2.f32 %v1564_v25 }
 0x3c3   : > { %v4892_v26 = vpop.eup %4891 }
 0x3c4   : > { %v1557_v27 = vpop.xlane.xlu1 %1556  ;;  %v1576_v28 = vsel %vm1353_vm2, %v4892_v26, 0.0 }
 0x3c5   : > { %v1561_v29 = vsub.f32 %v1545_v12, %v1557_v27  ;;  %1577 = vadd.xlane.f32.xlu0 %v1576_v28 }
 0x3c7   : > { %v1568_v30 = vmul.f32 1.442695, %v1561_v29 }
 0x3c9   : > { %4895 = vpow2.f32 %v1568_v30 }
 0x3cb   : > { %v4894_v31 = vpop.eup %4893 }
 0x3cc   : > { %v1573_v32 = vsel %vm1353_vm2, %v4894_v31, 0.0 }
 0x3cd   : > { %1574 = vadd.xlane.f32.xlu1 %v1573_v32 }
 0x3d3   : > { %v4896_v33 = vpop.eup %4895 }
 0x3d4   : > { %v1579_v34 = vsel %vm1353_vm2, %v4896_v33, 0.0 }
 0x3d5   : > { %1580 = vadd.xlane.f32.xlu1 %v1579_v34 }
 0x44a   : > { %v1572_v35 = vpop.xlane.xlu0 %1571 }
 0x44b   : > { %4897 = vrcp.f32 %v1572_v35 }
 0x452   : > { %v1578_v36 = vpop.xlane.xlu0 %1577 }
 0x453   : > { %4899 = vrcp.f32 %v1578_v36 }
 0x455   : > { %v4898_v37 = vpop.eup %4897 }
 0x456   : > { %v1586_v39 = vmul.f32 %v4898_v37, %v4890_v20 }
 0x458   : > { %v1590_v41 = vpack.c.bf16 %v1586_v39, %v1586_v39 }
 0x45a   : > { %4499 = vmatmul.mubr.msk.bf16.vlgmr.msra.gmra.mrb[28].mxu0 %vm1353_vm2, %v1590_v41  ;;  %v1575_v43 = vpop.xlane.xlu1 %1574 }
 0x45b   : > { %4509 = vmatpush3.bf16.msra.mxu0 %v1695_v42  ;;  %4901 = vrcp.f32 %v1575_v43  ;;  %4510 = vmatprep.mubr.msk.bf16.mxu0 %vm4998_vm1, %v4997_v9  ;;  %v4052_v42 = vld [vmem:[%s5902_s7] ss:$0 sm:$0xff] }
 0x45c   : > { %4520 = vmatprep.subr.bf16.mxu0 %v4997_v9 }
 0x45d   : > { %v4900_v44 = vpop.eup %4899 }
 0x45e   : > { %v1588_v45 = vmul.f32 %v4900_v44, %v4892_v26 }
 0x460   : > { %v1592_v46 = vpack.c.bf16 %v1588_v45, %v1588_v45 }
 0x462   : > { %4511 = vmatmul.mubr.msk.bf16.vlgmr.msra.gmra.mrb[32].mxu0 %vm1353_vm2, %v1592_v46  ;;  %v1581_v23 = vpop.xlane.xlu1 %1580 }
 0x463   : > { %4903 = vrcp.f32 %v1581_v23  ;;  %4522 = vmatprep.mubr.msk.bf16.mxu0 %vm4998_vm1, %v4997_v9  ;;  %4521 = vmatpush3.bf16.msra.mxu0 %v1791_v56 }
 0x464   : > { %4532 = vmatprep.subr.bf16.mxu0 %v4997_v9 }
 0x465   : > { %v4902_v47 = vpop.eup %4901 }
 0x466   : > { %v1587_v50 = vmul.f32 %v4902_v47, %v4894_v31 }
 0x468   : > { %v1591_v51 = vpack.c.bf16 %v1587_v50, %v1587_v50 }
 0x46a   : > { %4505 = vmatmul.mubr.msk.bf16.vlgmr.msra.gmra.mrb[36].mxu1 %vm1353_vm2, %v1591_v51 }
 0x46b   : > { %4515 = vmatpush3.bf16.msra.mxu1 %v1741_v52  ;;  %4516 = vmatprep.mubr.msk.bf16.mxu1 %vm4998_vm1, %v4997_v9 }
 0x46c   : > { %4526 = vmatprep.subr.bf16.mxu1 %v4997_v9 }
 0x46d   : > { %v4904_v53 = vpop.eup %4903 }
 0x46e   : > { %v1589_v54 = vmul.f32 %v4904_v53, %v4896_v33 }
 0x470   : > { %v1593_v55 = vpack.c.bf16 %v1589_v54, %v1589_v54 }
 0x472   : > { %4517 = vmatmul.mubr.msk.bf16.vlgmr.msra.gmra.mrb[40].mxu1 %vm1353_vm2, %v1593_v55  ;;  %v4841_v55 = vld [vmem:[%s5905_s10] sm:$0xff]  }
 0x473   : > { %4528 = vmatprep.mubr.msk.bf16.mxu1 %vm4998_vm1, %v4997_v9  ;;  %4527 = vmatpush3.bf16.msra.mxu1 %v1837_v58 }
 0x474   : > { %4538 = vmatprep.subr.bf16.mxu1 %v4997_v9 }
 0x52d   : > { %v1639_v60 = vpop.f32.mrb[28].mxu0 }
 0x52e   : > { %v1783_v61 = vpack.c.bf16 %v1639_v60, %v1639_v60  ;;  %v4500_v62 = vpop.f32.mrb[29].mxu0 }
 0x52f   : > { %v1642_v1 = vpop.f32.mrb[30].mxu0 }
 0x530   : > { %v4501_v2 = vpop.f32.mrb[31].mxu0  ;;  %4523 = vmatmul.mubr.msk.bf16.vlgmr.msra.gmra.mrb[36].mxu0 %vm1353_vm2, %v1783_v61  ;;  %v4054_v61 = vld [vmem:[%s5904_s9] ss:$0 sm:$0xff] }
 0x531   : > { %4533 = vmatpush3.bf16.msra.mxu0 %v1883_v63  ;;  %4534 = vmatprep.mubr.msk.bf16.mxu0 %vm4998_vm1, %v4997_v9  ;;  %v4055_v2 = vld [vmem:[%s5906_s11] ss:$0 sm:$0xff] }
 0x532   : > { %4544 = vmatprep.subr.bf16.mxu0 %v4997_v9 }
 0x535   : > { %v1731_v3 = vpop.f32.mrb[32].mxu0 }
 0x536   : > { %v1785_v4 = vpack.c.bf16 %v1731_v3, %v1731_v3  ;;  %v4512_v5 = vpop.f32.mrb[33].mxu0 }
 0x537   : > { %v1734_v6 = vpop.f32.mrb[34].mxu0 }
 0x538   : > { %v4513_v7 = vpop.f32.mrb[35].mxu0  ;;  %4535 = vmatmul.mubr.msk.bf16.vlgmr.msra.gmra.mrb[40].mxu0 %vm1353_vm2, %v1785_v4 }
 0x539   : > { %4548 = vmatprep.mubr.msk.bf16.mxu0 %vm4998_vm1, %v4997_v9  ;;  %4545 = vmatpush3.bf16.msra.mxu0 %v4841_v55  ;;  %v4072_v55 = vld [vmem:[%s5946_s21 + $0x1] ss:$0 sm:$0xff] }
 0x53a   : > { %4546 = vmatprep.subr.bf16.mxu0 %v4997_v9 }
 0x53d   : > { %v1685_v10 = vpop.f32.mrb[36].mxu1 }
 0x53e   : > { %v1784_v11 = vpack.c.bf16 %v1685_v10, %v1685_v10  ;;  %v4506_v12 = vpop.f32.mrb[37].mxu1  ;;  %v4844_v10 = vld [vmem:[%s5909_s14 + $0x8] sm:$0xff]  }
 0x53f   : > { %v1688_v14 = vpop.f32.mrb[38].mxu1 }
 0x540   : > { %v4507_v15 = vpop.f32.mrb[39].mxu1  ;;  %4529 = vmatmul.mubr.msk.bf16.vlgmr.msra.gmra.mrb[44].mxu1 %vm1353_vm2, %v1784_v11 }
 0x541   : > { %4539 = vmatpush3.bf16.msra.mxu1 %v1929_v13  ;;  %4540 = vmatprep.mubr.msk.bf16.mxu1 %vm4998_vm1, %v4997_v9  ;;  %v4845_v15 = vld [vmem:[%s5909_s14 + $0x10] sm:$0xff]  }
 0x542   : > { %4552 = vmatprep.subr.bf16.mxu1 %v4997_v9 }
 0x545   : > { %v1777_v16 = vpop.f32.mrb[40].mxu1 }
 0x546   : > { %v1786_v17 = vpack.c.bf16 %v1777_v16, %v1777_v16  ;;  %v4518_v18 = vpop.f32.mrb[41].mxu1  ;;  %v4846_v16 = vld [vmem:[%s5909_s14 + $0x18] sm:$0xff]  }
 0x547   : > { %v1780_v19 = vpop.f32.mrb[42].mxu1  ;;  %v4848_v18 = vld [vmem:[%s5909_s14 + $0x28] sm:$0xff]  }
 0x548   : > { %v4519_v20 = vpop.f32.mrb[43].mxu1  ;;  %4541 = vmatmul.mubr.msk.bf16.vlgmr.msra.gmra.mrb[48].mxu1 %vm1353_vm2, %v1786_v17  ;;  %v4847_v17 = vld [vmem:[%s5909_s14 + $0x20] sm:$0xff]   ;;  %v4849_v19 = vld [vmem:[%s5909_s14 + $0x30] sm:$0xff]  }
 0x549   : > { %4568 = vmatprep.mubr.msk.bf16.mxu1 %vm4998_vm1, %v4997_v9  ;;  %4553 = vmatpush3.bf16.msra.mxu1 %v4843_v8  ;;  %v4850_v20 = vld [vmem:[%s5909_s14 + $0x38] sm:$0xff]   ;;  %v4867_v8 = vld [vmem:[%s5949_s20 + $0x50] sm:$0xff]  }
 0x54a   : > { %4554 = vmatprep.subr.bf16.mxu1 %v4997_v9 }
 0x54d   : > { %4555 = vmatpush3.bf16.msra.mxu1 %v4844_v10  ;;  %v4868_v10 = vld [vmem:[%s5949_s20 + $0x58] sm:$0xff]  }
 0x54e   : > { %4556 = vmatprep.subr.bf16.mxu1 %v4997_v9 }
 0x551   : > { %4557 = vmatpush3.bf16.msra.mxu1 %v4845_v15  ;;  %v4873_v15 = vld [vmem:[%s5950_s5 + $0x70] sm:$0xff]  }
 0x552   : > { %4558 = vmatprep.subr.bf16.mxu1 %v4997_v9 }
 0x555   : > { %4559 = vmatpush3.bf16.msra.mxu1 %v4846_v16  ;;  %v4874_v16 = vld [vmem:[%s5950_s5 + $0x78] sm:$0xff]  }
 0x556   : > { %4560 = vmatprep.subr.bf16.mxu1 %v4997_v9 }
 0x559   : > { %4561 = vmatpush3.bf16.msra.mxu1 %v4847_v17 }
 0x55a   : > { %4562 = vmatprep.subr.bf16.mxu1 %v4997_v9 }
 0x55d   : > { %4563 = vmatpush3.bf16.msra.mxu1 %v4848_v18 }
 0x55e   : > { %4564 = vmatprep.subr.bf16.mxu1 %v4997_v9 }
 0x561   : > { %4565 = vmatpush3.bf16.msra.mxu1 %v4849_v19 }
 0x562   : > { %4566 = vmatprep.subr.bf16.mxu1 %v4997_v9 }
 0x565   : > { %4567 = vmatpush3.bf16.msra.mxu1 %v4850_v20 }
 0x566   : > { %4604 = vmatprep.subr.bf16.mxu1 %v4997_v9 }
 0x603   : > { %v1827_v21 = vpop.f32.mrb[36].mxu0 }
 0x604   : > { %v4524_v22 = vpop.f32.mrb[37].mxu0  ;;  %v1971_v31 = vsel %vm636_vm0, %v1827_v21, 0.0 }
 0x605   : > { %v1830_v24 = vpop.f32.mrb[38].mxu0 }
 0x606   : > { %v4525_v25 = vpop.f32.mrb[39].mxu0 }
 0x60b   : > { %v1919_v26 = vpop.f32.mrb[40].mxu0 }
 0x60c   : > { %v4536_v27 = vpop.f32.mrb[41].mxu0  ;;  %v1974_v36 = vsel %vm636_vm0, %v1919_v26, 0.0  ;;  %v4059_v26 = vld [vmem:[%s5907_s12] ss:$0 sm:$0xff] }
 0x60d   : > { %v1922_v28 = vpop.f32.mrb[42].mxu0 }
 0x60e   : > { %v4537_v29 = vpop.f32.mrb[43].mxu0  ;;  %v4060_v28 = vld [vmem:[%s5908_s13] ss:$0 sm:$0xff] }
 0x613   : > { %v1873_v30 = vpop.f32.mrb[44].mxu1 }
 0x614   : > { %v1972_v32 = vsel %vm636_vm0, %v1873_v30, 0.0  ;;  %v4530_v33 = vpop.f32.mrb[45].mxu1 }
 0x615   : > { %v1973_v34 = vadd.f32 %v1972_v32, %v1971_v31  ;;  %v1876_v35 = vpop.f32.mrb[46].mxu1  ;;  %v4061_v33 = vld [vmem:[%s5910_s15] ss:$0 sm:$0xff] }
 0x616   : > { %v4531_v37 = vpop.f32.mrb[47].mxu1 }
 0x617   : > { %v1975_v38 = vadd.f32 %v1974_v36, %v1973_v34 }
 0x61b   : > { %v1965_v39 = vpop.f32.mrb[48].mxu1 }
 0x61c   : > { %v1976_v41 = vsel %vm636_vm0, %v1965_v39, 0.0  ;;  %v4542_v43 = vpop.f32.mrb[49].mxu1 }
 0x61d   : > { %v1977_v44 = vadd.f32 %v1976_v41, %v1975_v38  ;;  %v1968_v45 = vpop.f32.mrb[50].mxu1 }
 0x61e   : > { %v4543_v46 = vpop.f32.mrb[51].mxu1 }
 0x61f   : > { %v1985_v23 = vadd.f32 %v4052_v42, %v1977_v44 }
 0x621   : > { %v5430_v47 = vadd.f32 %v1985_v23, %v5158_v0  ;;  %v4842_v0 = vld [vmem:[%s5905_s10 + $0x8] sm:$0xff]   ;;  %v4851_v23 = vld [vmem:[%s5945_s3 + $0x40] sm:$0xff]  }
 0x622   : > { %4547 = vmatpush3.bf16.msra.mxu0 %v4842_v0 }
 0x623   : > { %v1989_v49 = vsel %vm636_vm0, %v5430_v47, 0.0  ;;  %4572 = vmatprep.subr.bf16.mxu0 %v4997_v9 }
 0x624   : > { %1990 = vadd.xlane.f32.xlu0 %v1989_v49  ;;  %v4853_v49 = vld [vmem:[%s5945_s3 + $0x48] sm:$0xff]  }
 0x6b1   : > { %v1991_v50 = vpop.xlane.xlu0 %1990 }
 0x6b2   : > { %v1992_v51 = vmul.f32 0.03125, %v1991_v50  ;;  %v4854_v50 = vld [vmem:[%s5949_s20 + $0x48] sm:$0xff]  }
 0x6b4   : > { %v1993_v52 = vsub.f32 %v5430_v47, %v1992_v51 }
 0x6b6   : > { %v1994_v53 = vmul.f32 %v1993_v52, %v1993_v52 }
 0x6b8   : > { %v1995_v54 = vsel %vm636_vm0, %v1994_v53, 0.0 }
 0x6b9   : > { %1996 = vadd.xlane.f32.xlu1 %v1995_v54 }
 0x746   : > { %v1997_v40 = vpop.xlane.xlu1 %1996 }
 0x747   : > { %v1998_v56 = vmul.f32 0.03125, %v1997_v40  ;;  %v4073_v40 = vld [vmem:[%s5947_s26 + $0x1] ss:$0 sm:$0xff] }
 0x749   : > { %v1999_v57 = vadd.f32 1e-05, %v1998_v56 }
 0x74b   : > { %4905 = vrsqrt.f32 %v1999_v57 }
 0x755   : > { %v4906_v58 = vpop.eup %4905 }
 0x756   : > { %v2001_v60 = vmul.f32 %v4906_v58, %v1993_v52  ;;  %v4855_v58 = vld [vmem:[%s5945_s3 + $0x50] sm:$0xff]  }
 0x758   : > { %v2008_v62 = vmul.f32 %v4053_v59, %v2001_v60  ;;  %v4856_v59 = vld [vmem:[%s5949_s20 + $0x60] sm:$0xff]  }
 0x75a   : > { %v2015_v63 = vadd.f32 %v4054_v61, %v2008_v62  ;;  %v4857_v61 = vld [vmem:[%s5945_s3 + $0x58] sm:$0xff]   ;;  %v4858_v62 = vld [vmem:[%s5949_s20 + $0x68] sm:$0xff]  }
 0x75c   : > { %v2016_v1 = vpack.c.bf16 %v2015_v63, %v2015_v63  ;;  %v4859_v63 = vld [vmem:[%s5945_s3 + $0x60] sm:$0xff]  }
 0x75e   : > { %4549 = vmatmul.mubr.msk.bf16.vlgmr.msra.gmra.mrb[44].mxu0 %vm636_vm0, %v2016_v1  ;;  %v4860_v1 = vld [vmem:[%s5950_s5 + $0x40] sm:$0xff]  }
 0x75f   : > { %4576 = vmatprep.mubr.msk.bf16.mxu0 %vm4998_vm1, %v4997_v9  ;;  %4573 = vmatpush3.bf16.msra.mxu0 %v4851_v23 }
 0x760   : > { %4574 = vmatprep.subr.bf16.mxu0 %v4997_v9 }
 0x763   : > { %4575 = vmatpush3.bf16.msra.mxu0 %v4853_v49 }
 0x764   : > { %4580 = vmatprep.subr.bf16.mxu0 %v4997_v9 }
 0x831   : > { %v2077_v3 = vpop.f32.mrb[44].mxu0 }
 0x832   : > { %v2078_v4 = vadd.f32 %v4055_v2, %v2077_v3  ;;  %v4550_v5 = vpop.f32.mrb[45].mxu0  ;;  %v4861_v2 = vld [vmem:[%s5945_s3 + $0x68] sm:$0xff]  }
 0x833   : > { %v2080_v6 = vpop.f32.mrb[46].mxu0  ;;  %v4862_v3 = vld [vmem:[%s5950_s5 + $0x48] sm:$0xff]   ;;  %v4864_v5 = vld [vmem:[%s5950_s5 + $0x60] sm:$0xff]  }
 0x834   : > { %2085 = vadd.xlane.f32.xlu0 %v2078_v4  ;;  %v4551_v7 = vpop.f32.mrb[47].mxu0  ;;  %v4865_v6 = vld [vmem:[%s5945_s3 + $0x78] sm:$0xff]  }
 0x835   : > { %v4866_v7 = vld [vmem:[%s5950_s5 + $0x68] sm:$0xff]  }
 0x8c1   : > { %v2086_v11 = vpop.xlane.xlu0 %2085 }
 0x8c2   : > { %v2088_v12 = vmul.f32 0.0078125, %v2086_v11  ;;  %v4869_v11 = vld [vmem:[%s5949_s20 + $0x70] sm:$0xff]  }
 0x8c4   : > { %v2089_v13 = vsub.f32 %v2078_v4, %v2088_v12  ;;  %v4863_v4 = vld [vmem:[%s5945_s3 + $0x70] sm:$0xff]   ;;  %v4870_v12 = vld [vmem:[%s5949_s20 + $0x78] sm:$0xff]   ;;  %s5953_s3 = sld [smem:[#allocation17_spill]] }
 0x8c6   : > { %v2090_v14 = vmul.f32 %v2089_v13, %v2089_v13 }
 0x8c8   : > { %2091 = vadd.xlane.f32.xlu1 %v2090_v14  ;;  %v4872_v14 = vld [vmem:[%s5950_s5 + $0x58] sm:$0xff]  }
 0x955   : > { %v2092_v21 = vpop.xlane.xlu1 %2091 }
 0x956   : > { %v2093_v22 = vmul.f32 0.0078125, %v2092_v21 }
 0x958   : > { %v2094_v24 = vadd.f32 1e-05, %v2093_v22 }
 0x95a   : > { %4907 = vrsqrt.f32 %v2094_v24 }
 0x964   : > { %v4908_v25 = vpop.eup %4907 }
 0x965   : > { %v2096_v27 = vmul.f32 %v4908_v25, %v2089_v13  ;;  %v4871_v13 = vld [vmem:[%s5950_s5 + $0x50] sm:$0xff]   ;;  %s5853_s5 = scalar_lea.hbm %s5953_s3, %s4226_s1 }
 0x967   : > { %v2103_v29 = vmul.f32 %v4059_v26, %v2096_v27 }
 0x969   : > { %v2110_v30 = vadd.f32 %v4060_v28, %v2103_v29 }
 0x96b   : > { %v2111_v31 = vmax.f32 %v2110_v30, 0.0 }
 0x96d   : > { %v2112_v32 = vpack.c.bf16 %v2111_v31, %v2111_v31 }
 0x96f   : > { %4569 = vmatmul.mubr.bf16.vlgmr.msra.gmra.mrb[52].mxu1 %v2112_v32 }
 0x970   : > { %4608 = vmatprep.mubr.msk.bf16.mxu1 %vm4998_vm1, %v4997_v9 }
 0xa42   : > { %v2218_v34 = vpop.f32.mrb[52].mxu1 }
 0xa43   : > { %v2219_v35 = vadd.f32 %v4061_v33, %v2218_v34  ;;  %v4570_v36 = vpop.f32.mrb[53].mxu1 }
 0xa44   : > { %v2221_v37 = vpop.f32.mrb[54].mxu1 }
 0xa45   : > { %v5500_v38 = vadd.f32 %v2219_v35, %v5430_v47  ;;  %v4571_v39 = vpop.f32.mrb[55].mxu1  ;;  %v4852_v47 = vld [vmem:[%s5949_s20 + $0x40] sm:$0xff]  }
 0xa46   : > { %4605 = vmatpush3.bf16.msra.mxu1 %v4852_v47 }
 0xa47   : > { %v2229_v41 = vsel %vm636_vm0, %v5500_v38, 0.0  ;;  %4606 = vmatprep.subr.bf16.mxu1 %v4997_v9 }
 0xa48   : > { %2230 = vadd.xlane.f32.xlu0 %v2229_v41 }
 0xa4a   : > { %4607 = vmatpush3.bf16.msra.mxu1 %v4854_v50 }
 0xa4b   : > { %4620 = vmatprep.subr.bf16.mxu1 %v4997_v9 }
 0xad5   : > { %v2231_v42 = vpop.xlane.xlu0 %2230 }
 0xad6   : > { %v2232_v43 = vmul.f32 0.03125, %v2231_v42 }
 0xad8   : > { %v2233_v44 = vsub.f32 %v5500_v38, %v2232_v43 }
 0xada   : > { %v2234_v45 = vmul.f32 %v2233_v44, %v2233_v44 }
 0xadc   : > { %v2235_v46 = vsel %vm636_vm0, %v2234_v45, 0.0 }
 0xadd   : > { %2236 = vadd.xlane.f32.xlu1 %v2235_v46 }
 0xb6a   : > { %v2237_v51 = vpop.xlane.xlu1 %2236 }
 0xb6b   : > { %v2238_v52 = vmul.f32 0.03125, %v2237_v51 }
 0xb6d   : > { %v2239_v53 = vadd.f32 1e-05, %v2238_v52 }
 0xb6f   : > { %4909 = vrsqrt.f32 %v2239_v53 }
 0xb79   : > { %v4910_v54 = vpop.eup %4909 }
 0xb7a   : > { %v2241_v0 = vmul.f32 %v4910_v54, %v2233_v44 }
 0xb7c   : > { %v2248_v56 = vmul.f32 %v4072_v55, %v2241_v0 }
 0xb7e   : > { %v2255_v57 = vadd.f32 %v4073_v40, %v2248_v56 }
 0xb80   : > { %v5534_v60 = vpack.c.bf16 %v2255_v57, %v2255_v57 }
 0xb82   : > { %4577 = vmatmul.mubr.msk.bf16.vlgmr.msra.gmra.mrb[48].mxu0 %vm636_vm0, %v5534_v60  ;;  %4609 = vmatmul.mubr.msk.bf16.vlgmr.msra.gmra.mrb[56].mxu1 %vm636_vm0, %v5534_v60 }
 0xb83   : > { %4581 = vmatpush3.bf16.msra.mxu0 %v4855_v58  ;;  %4621 = vmatpush3.bf16.msra.mxu1 %v4856_v59 }
 0xb84   : > { %4582 = vmatprep.subr.bf16.mxu0 %v4997_v9  ;;  %4622 = vmatprep.subr.bf16.mxu1 %v4997_v9 }
 0xb85   : > { %4584 = vmatprep.mubr.msk.bf16.mxu0 %vm4998_vm1, %v4997_v9  ;;  %4624 = vmatprep.mubr.msk.bf16.mxu1 %vm4998_vm1, %v4997_v9 }
 0xb87   : > { %4583 = vmatpush3.bf16.msra.mxu0 %v4857_v61  ;;  %4623 = vmatpush3.bf16.msra.mxu1 %v4858_v62 }
 0xb88   : > { %4588 = vmatprep.subr.bf16.mxu0 %v4997_v9  ;;  %4636 = vmatprep.subr.bf16.mxu1 %v4997_v9 }
 0xb8a   : > { %4585 = vmatmul.mubr.msk.bf16.vlgmr.msra.gmra.mrb[52].mxu0 %vm636_vm0, %v5534_v60  ;;  %4625 = vmatmul.mubr.msk.bf16.vlgmr.msra.gmra.mrb[60].mxu1 %vm636_vm0, %v5534_v60 }
 0xb8b   : > { %4589 = vmatpush3.bf16.msra.mxu0 %v4859_v63  ;;  %4637 = vmatpush3.bf16.msra.mxu1 %v4860_v1 }
 0xb8c   : > { %4590 = vmatprep.subr.bf16.mxu0 %v4997_v9  ;;  %4638 = vmatprep.subr.bf16.mxu1 %v4997_v9 }
 0xb8d   : > { %4592 = vmatprep.mubr.msk.bf16.mxu0 %vm4998_vm1, %v4997_v9  ;;  %4640 = vmatprep.mubr.msk.bf16.mxu1 %vm4998_vm1, %v4997_v9 }
 0xb8f   : > { %4591 = vmatpush3.bf16.msra.mxu0 %v4861_v2  ;;  %4639 = vmatpush3.bf16.msra.mxu1 %v4862_v3 }
 0xb90   : > { %4596 = vmatprep.subr.bf16.mxu0 %v4997_v9  ;;  %4652 = vmatprep.subr.bf16.mxu1 %v4997_v9 }
 0xb92   : > { %4593 = vmatmul.mubr.msk.bf16.vlgmr.msra.gmra.mrb[56].mxu0 %vm636_vm0, %v5534_v60  ;;  %4641 = vmatmul.mubr.msk.bf16.vlgmr.msra.gmra.mrb[64].mxu1 %vm636_vm0, %v5534_v60 }
 0xb93   : > { %4597 = vmatpush3.bf16.msra.mxu0 %v4863_v4  ;;  %4653 = vmatpush3.bf16.msra.mxu1 %v4864_v5 }
 0xb94   : > { %4598 = vmatprep.subr.bf16.mxu0 %v4997_v9  ;;  %4654 = vmatprep.subr.bf16.mxu1 %v4997_v9 }
 0xb95   : > { %4600 = vmatprep.mubr.msk.bf16.mxu0 %vm4998_vm1, %v4997_v9  ;;  %4656 = vmatprep.mubr.msk.bf16.mxu1 %vm4998_vm1, %v4997_v9 }
 0xb97   : > { %4599 = vmatpush3.bf16.msra.mxu0 %v4865_v6  ;;  %4655 = vmatpush3.bf16.msra.mxu1 %v4866_v7 }
 0xb98   : > { %4612 = vmatprep.subr.bf16.mxu0 %v4997_v9  ;;  %4668 = vmatprep.subr.bf16.mxu1 %v4997_v9 }
 0xb9a   : > { %4601 = vmatmul.mubr.msk.bf16.vlgmr.msra.gmra.mrb[60].mxu0 %vm636_vm0, %v5534_v60  ;;  %4657 = vmatmul.mubr.msk.bf16.vlgmr.msra.gmra.mrb[68].mxu1 %vm636_vm0, %v5534_v60 }
 0xb9b   : > { %4613 = vmatpush3.bf16.msra.mxu0 %v4867_v8  ;;  %4616 = vmatprep.mubr.msk.bf16.mxu0 %vm4998_vm1, %v4997_v9 }
 0xb9c   : > { %4614 = vmatprep.subr.bf16.mxu0 %v4997_v9  ;;  %4670 = vmatprep.mubr.msk.bf16.mxu1 %vm4998_vm1, %v4997_v9 }
 0xb9f   : > { %4615 = vmatpush3.bf16.msra.mxu0 %v4868_v10 }
 0xba0   : > { %4628 = vmatprep.subr.bf16.mxu0 %v4997_v9 }
 0xba2   : > { %4617 = vmatmul.mubr.msk.bf16.vlgmr.msra.gmra.mrb[64].mxu0 %vm636_vm0, %v5534_v60 }
 0xba3   : > { %4629 = vmatpush3.bf16.msra.mxu0 %v4869_v11  ;;  %4632 = vmatprep.mubr.msk.bf16.mxu0 %vm4998_vm1, %v4997_v9 }
 0xba4   : > { %4630 = vmatprep.subr.bf16.mxu0 %v4997_v9 }
 0xba7   : > { %4631 = vmatpush3.bf16.msra.mxu0 %v4870_v12 }
 0xba8   : > { %4644 = vmatprep.subr.bf16.mxu0 %v4997_v9 }
 0xbaa   : > { %4633 = vmatmul.mubr.msk.bf16.vlgmr.msra.gmra.mrb[68].mxu0 %vm636_vm0, %v5534_v60 }
 0xbab   : > { %4645 = vmatpush3.bf16.msra.mxu0 %v4871_v13  ;;  %4648 = vmatprep.mubr.msk.bf16.mxu0 %vm4998_vm1, %v4997_v9 }
 0xbac   : > { %4646 = vmatprep.subr.bf16.mxu0 %v4997_v9 }
 0xbaf   : > { %4647 = vmatpush3.bf16.msra.mxu0 %v4872_v14 }
 0xbb0   : > { %4660 = vmatprep.subr.bf16.mxu0 %v4997_v9 }
 0xbb2   : > { %4649 = vmatmul.mubr.msk.bf16.vlgmr.msra.gmra.mrb[72].mxu0 %vm636_vm0, %v5534_v60 }
 0xbb3   : > { %4661 = vmatpush3.bf16.msra.mxu0 %v4873_v15  ;;  %4664 = vmatprep.mubr.msk.bf16.mxu0 %vm4998_vm1, %v4997_v9 }
 0xbb4   : > { %4662 = vmatprep.subr.bf16.mxu0 %v4997_v9 }
 0xbb7   : > { %4663 = vmatpush3.bf16.msra.mxu0 %v4874_v16 }
 0xbb8   : > { %4674 = vmatprep.subr.bf16.mxu0 %v4997_v9 }
 0xbba   : > { %4665 = vmatmul.mubr.msk.bf16.vlgmr.msra.gmra.mrb[76].mxu0 %vm636_vm0, %v5534_v60 }
 0xbbb   : > { %4676 = vmatprep.mubr.msk.bf16.mxu0 %vm4998_vm1, %v4997_v9 }
 0xc55   : > { %v2362_v17 = vpop.f32.mrb[48].mxu0  ;;  %v2570_v18 = vpop.f32.mrb[56].mxu1 }
 0xc56   : > { %v2944_v19 = vpack.c.bf16 %v2570_v18, %v2570_v18  ;;  %v4578_v20 = vpop.f32.mrb[49].mxu0  ;;  %v4610_v21 = vpop.f32.mrb[57].mxu1  ;;  %v2940_v30 = vpack.c.bf16 %v2362_v17, %v2362_v17 }
 0xc57   : > { %v2365_v22 = vpop.f32.mrb[50].mxu0  ;;  %v2573_v24 = vpop.f32.mrb[58].mxu1 }
 0xc58   : > { %v2952_v25 = vsel %vm1353_vm2, %v2944_v19, 0  ;;  %v4579_v26 = vpop.f32.mrb[51].mxu0  ;;  %v4611_v27 = vpop.f32.mrb[59].mxu1 }
 0xc59   : > { %4669 = vmatpush3.bf16.xpose.msra.mxu1 %v2952_v25 }
 0xc5a   : > { %4680 = vmatprep.subr.bf16.mxu1 %v4997_v9 }
 0xc5d   : > { %v2414_v28 = vpop.f32.mrb[52].mxu0  ;;  %v2674_v29 = vpop.f32.mrb[60].mxu1 }
 0xc5e   : > { %v2946_v31 = vpack.c.bf16 %v2674_v29, %v2674_v29  ;;  %v4586_v32 = vpop.f32.mrb[53].mxu0  ;;  %v4626_v33 = vpop.f32.mrb[61].mxu1  ;;  %v2941_v2 = vpack.c.bf16 %v2414_v28, %v2414_v28 }
 0xc5f   : > { %v2417_v34 = vpop.f32.mrb[54].mxu0  ;;  %v2677_v35 = vpop.f32.mrb[62].mxu1 }
 0xc60   : > { %v3044_v36 = vsel %vm1353_vm2, %v2946_v31, 0  ;;  %v4587_v37 = vpop.f32.mrb[55].mxu0  ;;  %v4627_v39 = vpop.f32.mrb[63].mxu1  ;;  %4671 = vmatmul.mubr.msk.bf16.vlgmr.msra.gmra.mrb[72].mxu1 %vm1353_vm2, %v2940_v30 }
 0xc61   : > { %4681 = vmatpush3.bf16.xpose.msra.mxu1 %v3044_v36  ;;  %4682 = vmatprep.mubr.msk.bf16.mxu1 %vm4998_vm1, %v4997_v9 }
 0xc62   : > { %4692 = vmatprep.subr.bf16.mxu1 %v4997_v9 }
 0xc65   : > { %v2466_v41 = vpop.f32.mrb[56].mxu0  ;;  %v2778_v42 = vpop.f32.mrb[64].mxu1 }
 0xc66   : > { %v2942_v43 = vpack.c.bf16 %v2466_v41, %v2466_v41  ;;  %v3188_v44 = vpack.c.bf16 %v2778_v42, %v2778_v42  ;;  %v4594_v45 = vpop.f32.mrb[57].mxu0  ;;  %v4642_v46 = vpop.f32.mrb[65].mxu1 }
 0xc67   : > { %v2469_v23 = vpop.f32.mrb[58].mxu0  ;;  %v2781_v47 = vpop.f32.mrb[66].mxu1 }
 0xc68   : > { %v3196_v49 = vsel %vm1601_vm3, %v3188_v44, 0  ;;  %v4595_v50 = vpop.f32.mrb[59].mxu0  ;;  %v4643_v51 = vpop.f32.mrb[67].mxu1  ;;  %4683 = vmatmul.mubr.msk.bf16.vlgmr.msra.gmra.mrb[76].mxu1 %vm1353_vm2, %v2942_v43 }
 0xc69   : > { %4693 = vmatpush3.bf16.msra.mxu1 %v3196_v49  ;;  %4694 = vmatprep.mubr.msk.bf16.mxu1 %vm4998_vm1, %v4997_v9 }
 0xc6a   : > { %4704 = vmatprep.subr.bf16.mxu1 %v4997_v9 }
 0xc6d   : > { %v2518_v52 = vpop.f32.mrb[60].mxu0  ;;  %v5670_v53 = vpop.f32.mrb[68].mxu1 }
 0xc6e   : > { %v4602_v54 = vpop.f32.mrb[61].mxu0  ;;  %v4658_v55 = vpop.f32.mrb[69].mxu1  ;;  %v2943_v10 = vpack.c.bf16 %v2518_v52, %v2518_v52 }
 0xc6f   : > { %v2521_v0 = vpop.f32.mrb[62].mxu0  ;;  %v2885_v40 = vpop.f32.mrb[70].mxu1 }
 0xc70   : > { %v4603_v56 = vpop.f32.mrb[63].mxu0  ;;  %v4659_v57 = vpop.f32.mrb[71].mxu1 }
 0xc75   : > { %v2622_v58 = vpop.f32.mrb[64].mxu0 }
 0xc76   : > { %v2945_v59 = vpack.c.bf16 %v2622_v58, %v2622_v58  ;;  %v4618_v60 = vpop.f32.mrb[65].mxu0 }
 0xc77   : > { %v2625_v61 = vpop.f32.mrb[66].mxu0 }
 0xc78   : > { %v2998_v62 = vsel %vm1353_vm2, %v2945_v59, 0  ;;  %v4619_v63 = vpop.f32.mrb[67].mxu0 }
 0xc79   : > { %4675 = vmatpush3.bf16.xpose.msra.mxu0 %v2998_v62 }
 0xc7a   : > { %4686 = vmatprep.subr.bf16.mxu0 %v4997_v9 }
 0xc7d   : > { %v2726_v1 = vpop.f32.mrb[68].mxu0 }
 0xc7e   : > { %v2947_v3 = vpack.c.bf16 %v2726_v1, %v2726_v1  ;;  %v4634_v4 = vpop.f32.mrb[69].mxu0 }
 0xc7f   : > { %v2729_v5 = vpop.f32.mrb[70].mxu0 }
 0xc80   : > { %v3090_v6 = vsel %vm1353_vm2, %v2947_v3, 0  ;;  %v4635_v7 = vpop.f32.mrb[71].mxu0  ;;  %4677 = vmatmul.mubr.msk.bf16.vlgmr.msra.gmra.mrb[80].mxu0 %vm1353_vm2, %v2941_v2 }
 0xc81   : > { %4687 = vmatpush3.bf16.xpose.msra.mxu0 %v3090_v6  ;;  %4688 = vmatprep.mubr.msk.bf16.mxu0 %vm4998_vm1, %v4997_v9 }
 0xc82   : > { %4698 = vmatprep.subr.bf16.mxu0 %v4997_v9 }
 0xc85   : > { %v2830_v8 = vpop.f32.mrb[72].mxu0 }
 0xc86   : > { %v3189_v11 = vpack.c.bf16 %v2830_v8, %v2830_v8  ;;  %v4650_v12 = vpop.f32.mrb[73].mxu0 }
 0xc87   : > { %v2833_v13 = vpop.f32.mrb[74].mxu0 }
 0xc88   : > { %v3242_v14 = vsel %vm1601_vm3, %v3189_v11, 0  ;;  %v4651_v15 = vpop.f32.mrb[75].mxu0  ;;  %4689 = vmatmul.mubr.msk.bf16.vlgmr.msra.gmra.mrb[84].mxu0 %vm1353_vm2, %v2943_v10  ;;  %v3190_v10 = vpack.c.bf16 %v5670_v53, %v5670_v53 }
 0xc89   : > { %4699 = vmatpush3.bf16.msra.mxu0 %v3242_v14  ;;  %4700 = vmatprep.mubr.msk.bf16.mxu0 %vm4998_vm1, %v4997_v9 }
 0xc8a   : > { %4710 = vmatprep.subr.bf16.mxu0 %v4997_v9  ;;  %v3288_v13 = vsel %vm1601_vm3, %v3190_v10, 0 }
 0xc8d   : > { %v5684_v16 = vpop.f32.mrb[76].mxu0 }
 0xc8e   : > { %v4666_v17 = vpop.f32.mrb[77].mxu0 }
 0xc8f   : > { %v2937_v18 = vpop.f32.mrb[78].mxu0 }
 0xc90   : > { %v4667_v19 = vpop.f32.mrb[79].mxu0 }
 0xd33   : > { %v2988_v20 = vpop.f32.mrb[72].mxu1 }
 0xd34   : > { %v3132_v21 = vmul.f32 0.17677669, %v2988_v20  ;;  %v4672_v22 = vpop.f32.mrb[73].mxu1  ;;  %v3191_v20 = vpack.c.bf16 %v5684_v16, %v5684_v16  ;;  %v4122_v16 = vld [vmem:[%s5901_s6 + $0x10] sm:$0xf] }
 0xd35   : > { %v2991_v24 = vpop.f32.mrb[74].mxu1 }
 0xd36   : > { %v4673_v25 = vpop.f32.mrb[75].mxu1  ;;  %v3136_v26 = vsel %vm5350_vm4, %v3132_v21, -inf  ;;  %v3334_v24 = vsel %vm1601_vm3, %v3191_v20, 0 }
 0xd37   : > { %v3140_v27 = vsel %vm1353_vm2, %v3136_v26, -inf }
 0xd38   : > { %3141 = vmax.xlane.f32.xlu0 %v3140_v27 }
 0xd3b   : > { %v3080_v28 = vpop.f32.mrb[76].mxu1 }
 0xd3c   : > { %v3134_v29 = vmul.f32 0.17677669, %v3080_v28  ;;  %v4684_v30 = vpop.f32.mrb[77].mxu1  ;;  %v3384_v28 = vsel %vm1601_vm3, %v4122_v16, 0 }
 0xd3d   : > { %v3083_v31 = vpop.f32.mrb[78].mxu1 }
 0xd3e   : > { %v4685_v32 = vpop.f32.mrb[79].mxu1  ;;  %v3138_v33 = vsel %vm5350_vm4, %v3134_v29, -inf  ;;  %v4123_v29 = vld [vmem:[%s5901_s6 + $0x14] sm:$0xf]  ;;  %v4124_v31 = vld [vmem:[%s5901_s6 + $0x18] sm:$0xf] }
 0xd3f   : > { %v3146_v34 = vsel %vm1353_vm2, %v3138_v33, -inf  ;;  %v3430_v30 = vsel %vm1601_vm3, %v4123_v29, 0 }
 0xd40   : > { %3147 = vmax.xlane.f32.xlu0 %v3146_v34 }
 0xd53   : > { %v3034_v35 = vpop.f32.mrb[80].mxu0 }
 0xd54   : > { %v3133_v36 = vmul.f32 0.17677669, %v3034_v35  ;;  %v4678_v37 = vpop.f32.mrb[81].mxu0  ;;  %v3476_v35 = vsel %vm1601_vm3, %v4124_v31, 0 }
 0xd55   : > { %v3037_v39 = vpop.f32.mrb[82].mxu0 }
 0xd56   : > { %v4679_v41 = vpop.f32.mrb[83].mxu0  ;;  %v3137_v42 = vsel %vm5350_vm4, %v3133_v36, -inf }
 0xd57   : > { %v3143_v43 = vsel %vm1353_vm2, %v3137_v42, -inf }
 0xd58   : > { %3144 = vmax.xlane.f32.xlu1 %v3143_v43 }
 0xd5b   : > { %v3126_v44 = vpop.f32.mrb[84].mxu0 }
 0xd5c   : > { %v3135_v45 = vmul.f32 0.17677669, %v3126_v44  ;;  %v4690_v46 = vpop.f32.mrb[85].mxu0 }
 0xd5d   : > { %v3129_v23 = vpop.f32.mrb[86].mxu0 }
 0xd5e   : > { %v4691_v47 = vpop.f32.mrb[87].mxu0  ;;  %v3139_v49 = vsel %vm5350_vm4, %v3135_v45, -inf  ;;  %v4125_v45 = vld [vmem:[%s5901_s6 + $0x1c] sm:$0xf] }
 0xd5f   : > { %v3149_v50 = vsel %vm1353_vm2, %v3139_v49, -inf }
 0xd60   : > { %3150 = vmax.xlane.f32.xlu1 %v3149_v50 }
 0xdc5   : > { %v3142_v51 = vpop.xlane.xlu0 %3141 }
 0xdc6   : > { %v3152_v52 = vsub.f32 %v3136_v26, %v3142_v51 }
 0xdc8   : > { %v3156_v54 = vmul.f32 1.442695, %v3152_v52 }
 0xdca   : > { %4911 = vpow2.f32 %v3156_v54 }
 0xdcd   : > { %v3148_v55 = vpop.xlane.xlu0 %3147 }
 0xdce   : > { %v3154_v0 = vsub.f32 %v3138_v33, %v3148_v55 }
 0xdd0   : > { %v3160_v40 = vmul.f32 1.442695, %v3154_v0 }
 0xdd2   : > { %4913 = vpow2.f32 %v3160_v40 }
 0xdd4   : > { %v4912_v56 = vpop.eup %4911 }
 0xdd5   : > { %v3164_v57 = vsel %vm1353_vm2, %v4912_v56, 0.0 }
 0xdd6   : > { %3165 = vadd.xlane.f32.xlu0 %v3164_v57 }
 0xddc   : > { %v4914_v58 = vpop.eup %4913 }
 0xddd   : > { %v3170_v59 = vsel %vm1353_vm2, %v4914_v58, 0.0 }
 0xdde   : > { %3171 = vadd.xlane.f32.xlu0 %v3170_v59 }
 0xde5   : > { %v3145_v48 = vpop.xlane.xlu1 %3144 }
 0xde6   : > { %v3153_v60 = vsub.f32 %v3137_v42, %v3145_v48 }
 0xde8   : > { %v3158_v61 = vmul.f32 1.442695, %v3153_v60 }
 0xdea   : > { %4915 = vpow2.f32 %v3158_v61 }
 0xded   : > { %v3151_v62 = vpop.xlane.xlu1 %3150 }
 0xdee   : > { %v3155_v63 = vsub.f32 %v3139_v49, %v3151_v62  ;;  %v3522_v49 = vsel %vm1601_vm3, %v4125_v45, 0  ;;  %v4878_v45 = vld [vmem:[%s5909_s14 + $0x48] sm:$0xff]  }
 0xdf0   : > { %v3162_v1 = vmul.f32 1.442695, %v3155_v63 }
 0xdf2   : > { %4917 = vpow2.f32 %v3162_v1 }
 0xdf4   : > { %v4916_v2 = vpop.eup %4915 }
 0xdf5   : > { %v3167_v3 = vsel %vm1353_vm2, %v4916_v2, 0.0 }
 0xdf6   : > { %3168 = vadd.xlane.f32.xlu1 %v3167_v3 }
 0xdfc   : > { %v4918_v4 = vpop.eup %4917 }
 0xdfd   : > { %v3173_v5 = vsel %vm1353_vm2, %v4918_v4, 0.0 }
 0xdfe   : > { %3174 = vadd.xlane.f32.xlu1 %v3173_v5 }
 0xe63   : > { %v3166_v6 = vpop.xlane.xlu0 %3165 }
 0xe64   : > { %4919 = vrcp.f32 %v3166_v6 }
 0xe6b   : > { %v3172_v7 = vpop.xlane.xlu0 %3171 }
 0xe6c   : > { %4921 = vrcp.f32 %v3172_v7 }
 0xe6e   : > { %v4920_v8 = vpop.eup %4919 }
 0xe6f   : > { %v3180_v11 = vmul.f32 %v4920_v8, %v4912_v56 }
 0xe71   : > { %v3184_v12 = vpack.c.bf16 %v3180_v11, %v3180_v11 }
 0xe73   : > { %4695 = vmatmul.mubr.msk.bf16.vlgmr.msra.gmra.mrb[80].mxu1 %vm1353_vm2, %v3184_v12  ;;  %v4175_v12 = vld [vmem:[%s5902_s7 + $0x1] ss:$0 sm:$0xff] }
 0xe74   : > { %4705 = vmatpush3.bf16.msra.mxu1 %v3288_v13  ;;  %4706 = vmatprep.mubr.msk.bf16.mxu1 %vm4998_vm1, %v4997_v9 }
 0xe75   : > { %4716 = vmatprep.subr.bf16.mxu1 %v4997_v9 }
 0xe76   : > { %v4922_v14 = vpop.eup %4921 }
 0xe77   : > { %v3182_v15 = vmul.f32 %v4922_v14, %v4914_v58 }
 0xe79   : > { %v3186_v17 = vpack.c.bf16 %v3182_v15, %v3182_v15 }
 0xe7b   : > { %4707 = vmatmul.mubr.msk.bf16.vlgmr.msra.gmra.mrb[84].mxu1 %vm1353_vm2, %v3186_v17 }
 0xe7c   : > { %4718 = vmatprep.mubr.msk.bf16.mxu1 %vm4998_vm1, %v4997_v9  ;;  %4717 = vmatpush3.bf16.msra.mxu1 %v3384_v28 }
 0xe7d   : > { %4728 = vmatprep.subr.bf16.mxu1 %v4997_v9 }
 0xe83   : > { %v3169_v53 = vpop.xlane.xlu1 %3168 }
 0xe84   : > { %4923 = vrcp.f32 %v3169_v53 }
 0xe8b   : > { %v3175_v18 = vpop.xlane.xlu1 %3174 }
 0xe8c   : > { %4925 = vrcp.f32 %v3175_v18 }
 0xe8e   : > { %v4924_v19 = vpop.eup %4923 }
 0xe8f   : > { %v3181_v21 = vmul.f32 %v4924_v19, %v4916_v2 }
 0xe91   : > { %v3185_v22 = vpack.c.bf16 %v3181_v21, %v3181_v21 }
 0xe93   : > { %4701 = vmatmul.mubr.msk.bf16.vlgmr.msra.gmra.mrb[88].mxu0 %vm1353_vm2, %v3185_v22 }
 0xe94   : > { %4711 = vmatpush3.bf16.msra.mxu0 %v3334_v24  ;;  %4712 = vmatprep.mubr.msk.bf16.mxu0 %vm4998_vm1, %v4997_v9 }
 0xe95   : > { %4722 = vmatprep.subr.bf16.mxu0 %v4997_v9 }
 0xe96   : > { %v4926_v25 = vpop.eup %4925 }
 0xe97   : > { %v3183_v26 = vmul.f32 %v4926_v25, %v4918_v4 }
 0xe99   : > { %v3187_v27 = vpack.c.bf16 %v3183_v26, %v3183_v26  ;;  %v4875_v26 = vld [vmem:[%s5905_s10 + $0x10] sm:$0xff]  }
 0xe9b   : > { %4713 = vmatmul.mubr.msk.bf16.vlgmr.msra.gmra.mrb[92].mxu0 %vm1353_vm2, %v3187_v27 }
 0xe9c   : > { %4724 = vmatprep.mubr.msk.bf16.mxu0 %vm4998_vm1, %v4997_v9  ;;  %4723 = vmatpush3.bf16.msra.mxu0 %v3430_v30  ;;  %v4178_v30 = vld [vmem:[%s5903_s8 + $0x1] ss:$0 sm:$0xff] }
 0xe9d   : > { %4734 = vmatprep.subr.bf16.mxu0 %v4997_v9 }
 0xf46   : > { %v3232_v32 = vpop.f32.mrb[80].mxu1 }
 0xf47   : > { %v3376_v33 = vpack.c.bf16 %v3232_v32, %v3232_v32  ;;  %v4696_v34 = vpop.f32.mrb[81].mxu1  ;;  %v4179_v32 = vld [vmem:[%s5904_s9 + $0x1] ss:$0 sm:$0xff] }
 0xf48   : > { %v3235_v36 = vpop.f32.mrb[82].mxu1 }
 0xf49   : > { %v4697_v37 = vpop.f32.mrb[83].mxu1  ;;  %4719 = vmatmul.mubr.msk.bf16.vlgmr.msra.gmra.mrb[88].mxu1 %vm1353_vm2, %v3376_v33  ;;  %v4185_v36 = vld [vmem:[%s5906_s11 + $0x1] ss:$0 sm:$0xff] }
 0xf4a   : > { %4729 = vmatpush3.bf16.msra.mxu1 %v3476_v35  ;;  %4730 = vmatprep.mubr.msk.bf16.mxu1 %vm4998_vm1, %v4997_v9 }
 0xf4b   : > { %4740 = vmatprep.subr.bf16.mxu1 %v4997_v9 }
 0xf4e   : > { %v3324_v39 = vpop.f32.mrb[84].mxu1 }
 0xf4f   : > { %v3378_v41 = vpack.c.bf16 %v3324_v39, %v3324_v39  ;;  %v4708_v42 = vpop.f32.mrb[85].mxu1 }
 0xf50   : > { %v3327_v43 = vpop.f32.mrb[86].mxu1 }
 0xf51   : > { %v4709_v44 = vpop.f32.mrb[87].mxu1  ;;  %4731 = vmatmul.mubr.msk.bf16.vlgmr.msra.gmra.mrb[92].mxu1 %vm1353_vm2, %v3378_v41 }
 0xf52   : > { %4744 = vmatprep.mubr.msk.bf16.mxu1 %vm4998_vm1, %v4997_v9  ;;  %4741 = vmatpush3.bf16.msra.mxu1 %v4875_v26  ;;  %v4877_v44 = vld [vmem:[%s5909_s14 + $0x40] sm:$0xff]  }
 0xf53   : > { %4742 = vmatprep.subr.bf16.mxu1 %v4997_v9 }
 0xf66   : > { %v3278_v46 = vpop.f32.mrb[88].mxu0 }
 0xf67   : > { %v3377_v23 = vpack.c.bf16 %v3278_v46, %v3278_v46  ;;  %v4702_v47 = vpop.f32.mrb[89].mxu0 }
 0xf68   : > { %v3281_v50 = vpop.f32.mrb[90].mxu0 }
 0xf69   : > { %v4703_v51 = vpop.f32.mrb[91].mxu0  ;;  %4725 = vmatmul.mubr.msk.bf16.vlgmr.msra.gmra.mrb[96].mxu0 %vm1353_vm2, %v3377_v23  ;;  %v4879_v50 = vld [vmem:[%s5909_s14 + $0x50] sm:$0xff]  }
 0xf6a   : > { %4735 = vmatpush3.bf16.msra.mxu0 %v3522_v49  ;;  %4736 = vmatprep.mubr.msk.bf16.mxu0 %vm4998_vm1, %v4997_v9  ;;  %v4880_v51 = vld [vmem:[%s5909_s14 + $0x58] sm:$0xff]  }
 0xf6b   : > { %4748 = vmatprep.subr.bf16.mxu0 %v4997_v9 }
 0xf6e   : > { %v3370_v52 = vpop.f32.mrb[92].mxu0 }
 0xf6f   : > { %v3379_v54 = vpack.c.bf16 %v3370_v52, %v3370_v52  ;;  %v4714_v55 = vpop.f32.mrb[93].mxu0  ;;  %v4881_v52 = vld [vmem:[%s5909_s14 + $0x60] sm:$0xff]  }
 0xf70   : > { %v3373_v0 = vpop.f32.mrb[94].mxu0  ;;  %v4883_v55 = vld [vmem:[%s5909_s14 + $0x70] sm:$0xff]  }
 0xf71   : > { %v4715_v40 = vpop.f32.mrb[95].mxu0  ;;  %4737 = vmatmul.mubr.msk.bf16.vlgmr.msra.gmra.mrb[100].mxu0 %vm1353_vm2, %v3379_v54  ;;  %v4882_v54 = vld [vmem:[%s5909_s14 + $0x68] sm:$0xff]   ;;  %v4884_v0 = vld [vmem:[%s5909_s14 + $0x78] sm:$0xff]  }
 0xf72   : > { %4764 = vmatprep.mubr.msk.bf16.mxu0 %vm4998_vm1, %v4997_v9  ;;  %4749 = vmatpush3.bf16.msra.mxu0 %v4877_v44 }
 0xf73   : > { %4750 = vmatprep.subr.bf16.mxu0 %v4997_v9 }
 0xf76   : > { %4751 = vmatpush3.bf16.msra.mxu0 %v4878_v45 }
 0xf77   : > { %4752 = vmatprep.subr.bf16.mxu0 %v4997_v9 }
 0xf7a   : > { %4753 = vmatpush3.bf16.msra.mxu0 %v4879_v50 }
 0xf7b   : > { %4754 = vmatprep.subr.bf16.mxu0 %v4997_v9 }
 0xf7e   : > { %4755 = vmatpush3.bf16.msra.mxu0 %v4880_v51 }
 0xf7f   : > { %4756 = vmatprep.subr.bf16.mxu0 %v4997_v9 }
 0xf82   : > { %4757 = vmatpush3.bf16.msra.mxu0 %v4881_v52 }
 0xf83   : > { %4758 = vmatprep.subr.bf16.mxu0 %v4997_v9 }
 0xf86   : > { %4759 = vmatpush3.bf16.msra.mxu0 %v4882_v54 }
 0xf87   : > { %4760 = vmatprep.subr.bf16.mxu0 %v4997_v9 }
 0xf8a   : > { %4761 = vmatpush3.bf16.msra.mxu0 %v4883_v55 }
 0xf8b   : > { %4762 = vmatprep.subr.bf16.mxu0 %v4997_v9 }
 0xf8e   : > { %4763 = vmatpush3.bf16.msra.mxu0 %v4884_v0 }
0x101c   : > { %v3420_v56 = vpop.f32.mrb[88].mxu1 }
0x101d   : > { %v4720_v57 = vpop.f32.mrb[89].mxu1  ;;  %v3564_v1 = vsel %vm636_vm0, %v3420_v56, 0.0 }
0x101e   : > { %v3423_v58 = vpop.f32.mrb[90].mxu1 }
0x101f   : > { %v4721_v59 = vpop.f32.mrb[91].mxu1 }
0x1020   : > { %v4191_v59 = vld [vmem:[%s5907_s12 + $0x1] ss:$0 sm:$0xff] }
0x1024   : > { %v3512_v48 = vpop.f32.mrb[92].mxu1 }
0x1025   : > { %v4732_v60 = vpop.f32.mrb[93].mxu1  ;;  %v3567_v6 = vsel %vm636_vm0, %v3512_v48, 0.0 }
0x1026   : > { %v3515_v61 = vpop.f32.mrb[94].mxu1  ;;  %v4192_v60 = vld [vmem:[%s5908_s13 + $0x1] ss:$0 sm:$0xff] }
0x1027   : > { %v4733_v62 = vpop.f32.mrb[95].mxu1 }
0x103c   : > { %v3466_v63 = vpop.f32.mrb[96].mxu0 }
0x103d   : > { %v3565_v2 = vsel %vm636_vm0, %v3466_v63, 0.0  ;;  %v4726_v3 = vpop.f32.mrb[97].mxu0 }
0x103e   : > { %v3566_v4 = vadd.f32 %v3565_v2, %v3564_v1  ;;  %v3469_v5 = vpop.f32.mrb[98].mxu0  ;;  %v4210_v2 = vld [vmem:[%s5910_s15 + $0x1] ss:$0 sm:$0xff] }
0x103f   : > { %v4727_v7 = vpop.f32.mrb[99].mxu0 }
0x1040   : > { %v3568_v8 = vadd.f32 %v3567_v6, %v3566_v4 }
0x1044   : > { %v3558_v10 = vpop.f32.mrb[100].mxu0 }
0x1045   : > { %v3569_v11 = vsel %vm636_vm0, %v3558_v10, 0.0  ;;  %v4738_v13 = vpop.f32.mrb[101].mxu0 }
0x1046   : > { %v3570_v14 = vadd.f32 %v3569_v11, %v3568_v8  ;;  %v3561_v15 = vpop.f32.mrb[102].mxu0 }
0x1047   : > { %v4739_v17 = vpop.f32.mrb[103].mxu0 }
0x1048   : > { %v3579_v53 = vadd.f32 %v4175_v12, %v3570_v14  ;;  %v4885_v17 = vld [vmem:[%s5913_s18] sm:$0xff]  }
0x104a   : > { %v5762_v18 = vadd.f32 %v3579_v53, %v5500_v38  ;;  %v4876_v38 = vld [vmem:[%s5905_s10 + $0x18] sm:$0xff]   ;;  %v4886_v53 = vld [vmem:[%s5913_s18 + $0x8] sm:$0xff]  }
0x104b   : > { %4743 = vmatpush3.bf16.msra.mxu1 %v4876_v38 }
0x104c   : > { %v3585_v19 = vsel %vm636_vm0, %v5762_v18, 0.0  ;;  %4768 = vmatprep.subr.bf16.mxu1 %v4997_v9 }
0x104d   : > { %3586 = vadd.xlane.f32.xlu0 %v3585_v19 }
0x10da   : > { %v3587_v20 = vpop.xlane.xlu0 %3586 }
0x10db   : > { %v3588_v21 = vmul.f32 0.03125, %v3587_v20 }
0x10dd   : > { %v3589_v22 = vsub.f32 %v5762_v18, %v3588_v21 }
0x10df   : > { %v3590_v24 = vmul.f32 %v3589_v22, %v3589_v22 }
0x10e1   : > { %v3591_v25 = vsel %vm636_vm0, %v3590_v24, 0.0 }
0x10e2   : > { %3592 = vadd.xlane.f32.xlu1 %v3591_v25  ;;  %v4220_v25 = vld [vmem:[%s5912_s17] ss:$0 sm:$0xff] }
0x116f   : > { %v3593_v27 = vpop.xlane.xlu1 %3592 }
0x1170   : > { %v3594_v16 = vmul.f32 0.03125, %v3593_v27 }
0x1172   : > { %v3595_v28 = vadd.f32 1e-05, %v3594_v16 }
0x1174   : > { %4927 = vrsqrt.f32 %v3595_v28 }
0x117e   : > { %v4928_v29 = vpop.eup %4927 }
0x117f   : > { %v3597_v31 = vmul.f32 %v4928_v29, %v3589_v22  ;;  %v4219_v22 = vld [vmem:[%s5911_s16] ss:$0 sm:$0xff] }
0x1181   : > { %v3604_v33 = vmul.f32 %v4178_v30, %v3597_v31 }
0x1183   : > { %v3611_v34 = vadd.f32 %v4179_v32, %v3604_v33 }
0x1185   : > { %v3612_v35 = vpack.c.bf16 %v3611_v34, %v3611_v34 }
0x1187   : > { %4745 = vmatmul.mubr.msk.bf16.vlgmr.msra.gmra.mrb[96].mxu1 %vm636_vm0, %v3612_v35 }
0x1188   : > { %4772 = vmatprep.mubr.msk.bf16.mxu1 %vm4998_vm1, %v4997_v9  ;;  %4769 = vmatpush3.bf16.msra.mxu1 %v4885_v17 }
0x1189   : > { %4770 = vmatprep.subr.bf16.mxu1 %v4997_v9  ;;  %v4221_v9 = vld [vmem:[%s5914_s19] ss:$0 sm:$0xff] }
0x118c   : > { %4771 = vmatpush3.bf16.msra.mxu1 %v4886_v53 }
0x125a   : > { %v3675_v37 = vpop.f32.mrb[96].mxu1 }
0x125b   : > { %v3676_v39 = vadd.f32 %v4185_v36, %v3675_v37  ;;  %v4746_v41 = vpop.f32.mrb[97].mxu1 }
0x125c   : > { %v3678_v42 = vpop.f32.mrb[98].mxu1 }
0x125d   : > { %3685 = vadd.xlane.f32.xlu0 %v3676_v39  ;;  %v4747_v43 = vpop.f32.mrb[99].mxu1 }
0x12ea   : > { %v3686_v46 = vpop.xlane.xlu0 %3685 }
0x12eb   : > { %v3687_v23 = vmul.f32 0.0078125, %v3686_v46 }
0x12ed   : > { %v3688_v47 = vsub.f32 %v3676_v39, %v3687_v23 }
0x12ef   : > { %v3689_v49 = vmul.f32 %v3688_v47, %v3688_v47 }
0x12f1   : > { %3690 = vadd.xlane.f32.xlu1 %v3689_v49 }
0x137e   : > { %v3691_v40 = vpop.xlane.xlu1 %3690 }
0x137f   : > { %v3692_v56 = vmul.f32 0.0078125, %v3691_v40 }
0x1381   : > { %v3693_v57 = vadd.f32 1e-05, %v3692_v56 }
0x1383   : > { %4929 = vrsqrt.f32 %v3693_v57 }
0x138d   : > { %v4930_v58 = vpop.eup %4929 }
0x138e   : > { %v3695_v48 = vmul.f32 %v4930_v58, %v3688_v47 }
0x1390   : > { %v3702_v61 = vmul.f32 %v4191_v59, %v3695_v48 }
0x1392   : > { %v3709_v62 = vadd.f32 %v4192_v60, %v3702_v61 }
0x1394   : > { %v3710_v63 = vmax.f32 %v3709_v62, 0.0 }
0x1396   : > { %v3711_v1 = vpack.c.bf16 %v3710_v63, %v3710_v63 }
0x1398   : > { %4765 = vmatmul.mubr.bf16.vlgmr.msra.gmra.mrb[104].mxu0 %v3711_v1 }
0x146b   : > { %v3819_v3 = vpop.f32.mrb[104].mxu0 }
0x146c   : > { %v3820_v4 = vadd.f32 %v4210_v2, %v3819_v3  ;;  %v4766_v5 = vpop.f32.mrb[105].mxu0 }
0x146d   : > { %v3822_v6 = vpop.f32.mrb[106].mxu0 }
0x146e   : > { %v4767_v7 = vpop.f32.mrb[107].mxu0  ;;  %v3825_v8 = vadd.f32 %v3820_v4, %v5762_v18 }
0x1470   : > { %v3828_v10 = vsel %vm636_vm0, %v3825_v8, 0.0 }
0x1471   : > { %3829 = vadd.xlane.f32.xlu0 %v3828_v10 }
0x14fe   : > { %v3830_v11 = vpop.xlane.xlu0 %3829 }
0x14ff   : > { %v3831_v12 = vmul.f32 0.03125, %v3830_v11 }
0x1501   : > { %v3832_v13 = vsub.f32 %v3825_v8, %v3831_v12 }
0x1503   : > { %v3833_v14 = vmul.f32 %v3832_v13, %v3832_v13 }
0x1505   : > { %v3834_v15 = vsel %vm636_vm0, %v3833_v14, 0.0 }
0x1506   : > { %3835 = vadd.xlane.f32.xlu1 %v3834_v15 }
0x1593   : > { %v3836_v18 = vpop.xlane.xlu1 %3835 }
0x1594   : > { %v3837_v19 = vmul.f32 0.03125, %v3836_v18 }
0x1596   : > { %v3838_v20 = vadd.f32 1e-05, %v3837_v19 }
0x1598   : > { %4931 = vrsqrt.f32 %v3838_v20 }
0x15a2   : > { %v4932_v21 = vpop.eup %4931 }
0x15a3   : > { %v3840_v24 = vmul.f32 %v4932_v21, %v3832_v13 }
0x15a5   : > { %v3847_v26 = vmul.f32 %v4219_v22, %v3840_v24 }
0x15a7   : > { %v3854_v38 = vadd.f32 %v4220_v25, %v3847_v26 }
0x15a9   : > { %v3855_v27 = vpack.c.bf16 %v3854_v38, %v3854_v38 }
0x15ab   : > { %4773 = vmatmul.mubr.msk.bf16.vlgmr.msra.gmra.mrb[100].mxu1 %vm636_vm0, %v3855_v27 }
0x167e   : > { %v3916_v16 = vpop.f32.mrb[100].mxu1 }
0x167f   : > { %v3917_v28 = vadd.f32 %v4221_v9, %v3916_v16  ;;  %v4774_v29 = vpop.f32.mrb[101].mxu1 }
0x1680   : > { %v3919_v30 = vpop.f32.mrb[102].mxu1 }
0x1681   : > { %3922 = vst [vmem:[%s620_s24] sm:$0xff] %v3917_v28  ;;  %v4775_v31 = vpop.f32.mrb[103].mxu1 }
0x1682   : > { %4946 = shalt.err (!%p4943_p3)
}
0x1683   : > { %s4947_s27 = scalar_lea.hbm %s5853_s5, 128  ;;  %s4951_s28 = scalar_lea.hbm %s5953_s3, 256 }
0x1684   : > { %p4948_p4 = scmp.ne.s32.totalorder %s5853_s5, %s4947_s27  ;;  %p4952_p9 = scmp.lt.u32.totalorder %s5853_s5, %s5953_s3 }
0x1685   : > { %p4953_p10 = scmp.lt.u32.totalorder %s4951_s28, %s4947_s27  ;;  %p4955_p12 = scmp.lt.u32.totalorder %s4947_s27, %s5853_s5 }
0x1686   : > { %p4949_p7 = pnand %p4948_p4, %p5143_p5 }
0x1687   : > { %p4954_p11 = por %p4953_p10, %p4952_p9 }
0x1688   : > { %p4950_p8 = pneg %p4949_p7 }
0x1689   : > { %p4956_p13 = por %p4955_p12, %p4954_p11 }
0x168b   : > { %p4957_p0 = pnand %p4956_p13, %p4950_p8 }
0x168d   : > { %4960 = shalt.err (!%p4957_p0)
}
0x168e   : > { %4776 = dma.vmem_to_hbm [thread:$0]  (%p5143_p5), %s5855_s29, 128, %s5853_s5, %s3924_s0  }
0x168f PF: > { %s5954_s2 = sld [smem:[#allocation7_spill]]  ;;  %s5955_s23 = sld [smem:[#allocation5_spill]] }
0x1695   : > { %p4782_p1 = scmp.ge.s32.totalorder %s5954_s2, 2  ;;  %s3949_s24 = sand.u32 1, %s5955_s23  }
0x1696   : > { %s3950_s30 = scalar_lea.sflag [#allocation3], %s3949_s24 }
0x1697   : > { %p4779_p2 = pnand %p4782_p1, %p5147_p6 }
0x1699   : > { %4978 = dma.done.wait (!%p4779_p2), %s3950_s30, 128  }
0x169a   : > { %4980 = vsyncadd (!%p4779_p2), %s3950_s30, 4294967168  ;;  %s5957_s24 = sld [smem:[#allocation8_spill]]  ;;  %s5958_s27 = sld [smem:[#allocation6_spill]] }
0x169b   : > { %s5959_s23 = sld [smem:[#allocation9_spill]]  ;;  %s5960_s1 = smov %s4987_s22 }
0x16a0   : > { %p30_p3 = scmp.ge.s32.totalorder %s5957_s24, 4   ;;  %s5961_s22 = smov %s5958_s27 }
0x16a2   :  { %32 = sbr.rel (!%p30_p3) target bundleno = 11 (0xb), region = 150 }
0x16a9   :  { %3955 = vsyncpa [#allocation3], 1 }
0x16aa   :  { %3957 = vsyncpa [#allocation3 + $0x1], 1 }

</bundles_post_ra>
